<compile_context>
chip_gen: v7x
topology: tpu7x:2x2x1
jax: 0.10.0
libtpu: 0.0.40
codegen_flags: <defaults>
</compile_context>

<pallas_src>
import functools

import jax
import jax.numpy as jnp
from jax.experimental import pallas as pl
from jax.experimental.pallas import tpu as pltpu


# ------------------------------ fused kernel ------------------------------- #

def _decoder_layer_kernel(*refs, num_heads, scale, has_la_mask, has_pad_mask):
    it = iter(refs)
    x_ref = next(it)                                   # (S_dec, d_model)
    enc_ref = next(it)                                 # (S_enc, d_model)
    la_ref = next(it) if has_la_mask else None         # (S_dec, S_dec)
    pad_ref = next(it) if has_pad_mask else None       # (1, S_enc)
    (wqkv1_ref, bqkv1_ref, wo1_ref, bo1_ref,
     wq2_ref, bq2_ref, wkv2_ref, bkv2_ref, wo2_ref, bo2_ref,
     w1_ref, b1_ref, w2_ref, b2_ref,
     out_ref, attn1_ref, attn2_ref) = it

    f32 = jnp.float32
    d_model = x_ref.shape[-1]
    dk = d_model // num_heads

    x = x_ref[...].astype(f32)
    enc = enc_ref[...].astype(f32)
    la = la_ref[...].astype(f32) if has_la_mask else None
    pm = pad_ref[...].astype(f32) if has_pad_mask else None

    def mha(q_lin, k_lin, v_lin, mask, wo_ref, bo_ref, attn_ref):
        # q_lin: (Sq, d_model); k_lin/v_lin: (Sk, d_model).  Heads are taken as
        # static lane slices; the wo projection is fused in as a per-head block
        # matmul:  sum_h ctx_h @ wo[h*dk:(h+1)*dk, :]  ==  concat_h(ctx_h) @ wo.
        acc = None
        for h in range(num_heads):
            sl = slice(h * dk, (h + 1) * dk)
            qh = q_lin[:, sl] * scale                  # scale q, not the scores
            kh = k_lin[:, sl]
            vh = v_lin[:, sl]
            # q @ k^T without materializing a transposed copy of k.
            s = jax.lax.dot_general(qh, kh, (((1,), (1,)), ((), ())),
                                    preferred_element_type=f32)      # (Sq, Sk)
            if mask is not None:
                s = s + mask * (-1e9)
            s = s - jnp.max(s, axis=-1, keepdims=True)
            e = jnp.exp(s)
            # Exact division (approx reciprocal skipped to preserve 1e-4 match).
            p = e / jnp.sum(e, axis=-1, keepdims=True)
            attn_ref[h] = p.astype(attn_ref.dtype)
            ctx = jnp.dot(p, vh, preferred_element_type=f32)          # (Sq, dk)
            part = jnp.dot(ctx, wo_ref[h * dk:(h + 1) * dk, :],
                           preferred_element_type=f32)                # (Sq, d_model)
            acc = part if acc is None else acc + part
        return acc + bo_ref[...]

    # ---- masked self-attention (single fused QKV matmul) ----
    qkv1 = jnp.dot(x, wqkv1_ref[...], preferred_element_type=f32) + bqkv1_ref[...]
    q1 = qkv1[:, 0 * d_model:1 * d_model]
    k1 = qkv1[:, 1 * d_model:2 * d_model]
    v1 = qkv1[:, 2 * d_model:3 * d_model]
    a1 = mha(q1, k1, v1, la, wo1_ref, bo1_ref, attn1_ref)             # (S_dec, d_model)

    # ---- encoder-decoder attention (fused KV matmul on encoder output) ----
    q2 = jnp.dot(a1, wq2_ref[...], preferred_element_type=f32) + bq2_ref[...]
    kv2 = jnp.dot(enc, wkv2_ref[...], preferred_element_type=f32) + bkv2_ref[...]
    k2 = kv2[:, 0 * d_model:1 * d_model]
    v2 = kv2[:, 1 * d_model:2 * d_model]
    a2 = mha(q2, k2, v2, pm, wo2_ref, bo2_ref, attn2_ref)             # (S_dec, d_model)

    # ---- position-wise feed-forward ----
    h1 = jnp.maximum(
        jnp.dot(a2, w1_ref[...], preferred_element_type=f32) + b1_ref[...], 0.0)
    out = jnp.dot(h1, w2_ref[...], preferred_element_type=f32) + b2_ref[...]
    out_ref[...] = out.astype(out_ref.dtype)


# --------------------------------- wrapper ---------------------------------- #

def decoder_layer(params, x, encoder_output, look_ahead_mask=None,
                  padding_mask=None, num_heads=4):
    B, S_dec, d_model = x.shape
    S_enc = encoder_output.shape[1]
    dk = d_model // num_heads

    sa, ca, ffn = params["self_attn"], params["cross_attn"], params["ffn"]
    wqkv1 = jnp.concatenate([sa["wq"], sa["wk"], sa["wv"]], axis=1)   # (d, 3d)
    bqkv1 = jnp.concatenate([sa["bq"], sa["bk"], sa["bv"]]).reshape(1, -1)
    wkv2 = jnp.concatenate([ca["wk"], ca["wv"]], axis=1)              # (d, 2d)
    bkv2 = jnp.concatenate([ca["bk"], ca["bv"]]).reshape(1, -1)

    has_la = look_ahead_mask is not None
    has_pad = padding_mask is not None

    inputs = [x, encoder_output]
    in_specs = [
        pl.BlockSpec((pl.Squeezed(), S_dec, d_model), lambda b: (b, 0, 0)),
        pl.BlockSpec((pl.Squeezed(), S_enc, d_model), lambda b: (b, 0, 0)),
    ]
    if has_la:
        inputs.append(jnp.broadcast_to(look_ahead_mask.astype(jnp.float32),
                                       (B, 1, S_dec, S_dec)))
        in_specs.append(pl.BlockSpec(
            (pl.Squeezed(), pl.Squeezed(), S_dec, S_dec), lambda b: (b, 0, 0, 0)))
    if has_pad:
        inputs.append(jnp.broadcast_to(padding_mask.astype(jnp.float32),
                                       (B, 1, 1, S_enc)))
        in_specs.append(pl.BlockSpec(
            (pl.Squeezed(), pl.Squeezed(), 1, S_enc), lambda b: (b, 0, 0, 0)))

    weights = [
        wqkv1, bqkv1, sa["wo"], sa["bo"].reshape(1, -1),
        ca["wq"], ca["bq"].reshape(1, -1), wkv2, bkv2,
        ca["wo"], ca["bo"].reshape(1, -1),
        ffn["w1"], ffn["b1"].reshape(1, -1), ffn["w2"], ffn["b2"].reshape(1, -1),
    ]
    inputs += weights
    # Grid-invariant block index (0,0): weights DMA'd once, resident across steps.
    # TODO(synk): at realistic d_model/d_ff these full-weight blocks must be tiled
    # over d_ff / rows and vmem_limit_bytes set (v7x has only 64 MiB VMEM).
    in_specs += [pl.BlockSpec(w.shape, lambda b: (0, 0)) for w in weights]

    kernel = functools.partial(
        _decoder_layer_kernel, num_heads=num_heads,
        scale=1.0 / float(dk) ** 0.5, has_la_mask=has_la, has_pad_mask=has_pad)

    out, attn1, attn2 = pl.pallas_call(
        kernel,
        grid=(B,),
        in_specs=in_specs,
        out_specs=[
            pl.BlockSpec((pl.Squeezed(), S_dec, d_model), lambda b: (b, 0, 0)),
            pl.BlockSpec((pl.Squeezed(), num_heads, S_dec, S_dec),
                         lambda b: (b, 0, 0, 0)),
            pl.BlockSpec((pl.Squeezed(), num_heads, S_dec, S_enc),
                         lambda b: (b, 0, 0, 0)),
        ],
        out_shape=[
            jax.ShapeDtypeStruct((B, S_dec, d_model), x.dtype),
            jax.ShapeDtypeStruct((B, num_heads, S_dec, S_dec), jnp.float32),
            jax.ShapeDtypeStruct((B, num_heads, S_dec, S_enc), jnp.float32),
        ],
        compiler_params=pltpu.CompilerParams(
            dimension_semantics=("parallel",)),
    )(*inputs)
    # TODO(synk): dropout_rate is unused (inference / eval semantics -> identity).
    return out, {"self_attention": attn1, "encoder_decoder_attention": attn2}


# ------------------------------ pure-JAX reference -------------------------- #

def _ref_mha(p, q_in, k_in, v_in, mask, num_heads):
    B, Sq, d_model = q_in.shape
    dk = d_model // num_heads

    def proj(x, w, b):
        y = x @ w + b
        return y.reshape(B, x.shape[1], num_heads, dk).transpose(0, 2, 1, 3)

    q = proj(q_in, p["wq"], p["bq"])
    k = proj(k_in, p["wk"], p["bk"])
    v = proj(v_in, p["wv"], p["bv"])
    scores = jnp.einsum("bhqd,bhkd->bhqk", q, k) / jnp.sqrt(jnp.float32(dk))
    if mask is not None:
        scores = scores + mask.astype(jnp.float32) * (-1e9)
    attn = jax.nn.softmax(scores, axis=-1)
    out = jnp.einsum("bhqk,bhkd->bhqd", attn, v).transpose(0, 2, 1, 3)
    out = out.reshape(B, Sq, d_model)
    return out @ p["wo"] + p["bo"], attn


def _ref_decoder(params, x, enc, lam, pm, num_heads):
    a1, w1 = _ref_mha(params["self_attn"], x, x, x, lam, num_heads)
    a2, w2 = _ref_mha(params["cross_attn"], a1, enc, enc, pm, num_heads)
    h = jnp.maximum(a2 @ params["ffn"]["w1"] + params["ffn"]["b1"], 0.0)
    return h @ params["ffn"]["w2"] + params["ffn"]["b2"], w1, w2


# ---------------------------------- main ------------------------------------ #

def _init_linear(key, d_in, d_out):
    k1, k2 = jax.random.split(key)
    w = jax.random.normal(k1, (d_in, d_out), jnp.float32) / jnp.sqrt(jnp.float32(d_in))
    b = 0.01 * jax.random.normal(k2, (d_out,), jnp.float32)
    return w, b


def _init_mha(key, d_model):
    ks = jax.random.split(key, 4)
    p = {}
    for name, k in zip(["q", "k", "v", "o"], ks):
        w, b = _init_linear(k, d_model, d_model)
        p[f"w{name}"], p[f"b{name}"] = w, b
    return p


if __name__ == "__main__":
    B, S_dec, S_enc = 2, 8, 8
    d_model, num_heads, d_ff = 32, 4, 64

    root = jax.random.PRNGKey(0)
    k_sa, k_ca, k_f1, k_f2, k_x, k_e = jax.random.split(root, 6)
    w1, b1 = _init_linear(k_f1, d_model, d_ff)
    w2, b2 = _init_linear(k_f2, d_ff, d_model)
    params = {
        "self_attn": _init_mha(k_sa, d_model),
        "cross_attn": _init_mha(k_ca, d_model),
        "ffn": {"w1": w1, "b1": b1, "w2": w2, "b2": b2},
    }

    x = jax.random.normal(k_x, (B, S_dec, d_model), jnp.float32)
    encoder_output = jax.random.normal(k_e, (B, S_enc, d_model), jnp.float32)

    # look-ahead (causal) mask: 1 = masked out (future positions)
    look_ahead_mask = jnp.triu(jnp.ones((S_dec, S_dec), jnp.float32), k=1)[None, None]
    look_ahead_mask = jnp.broadcast_to(look_ahead_mask, (B, 1, S_dec, S_dec))
    # padding mask: mask the last two encoder positions of batch element 1
    pad = jnp.zeros((B, 1, 1, S_enc), jnp.float32)
    padding_mask = pad.at[1, 0, 0, -2:].set(1.0)

    out, attn_w = decoder_layer(params, x, encoder_output,
                                look_ahead_mask, padding_mask, num_heads=num_heads)
    out = jax.block_until_ready(out)

    ref_out, ref_w1, ref_w2 = _ref_decoder(params, x, encoder_output,
                                           look_ahead_mask, padding_mask, num_heads)
    assert out.shape == (B, S_dec, d_model)
    assert attn_w["self_attention"].shape == (B, num_heads, S_dec, S_dec)
    assert attn_w["encoder_decoder_attention"].shape == (B, num_heads, S_dec, S_enc)
    assert jnp.allclose(out, ref_out, atol=1e-4, rtol=1e-4)
    assert jnp.allclose(attn_w["self_attention"], ref_w1, atol=1e-4, rtol=1e-4)
    assert jnp.allclose(attn_w["encoder_decoder_attention"], ref_w2,
                        atol=1e-4, rtol=1e-4)

    print("KERNEL_OK")
</pallas_src>

<mosaic_0001>
module attributes {stable_mosaic.version = 11 : i64} {
  func.func @_decoder_layer_kernel(%arg0: i32, %arg1: memref<1x8x32xf32, #tpu.memory_space<vmem>>, %arg2: memref<1x8x32xf32, #tpu.memory_space<vmem>>, %arg3: memref<1x1x8x8xf32, #tpu.memory_space<vmem>>, %arg4: memref<1x1x1x8xf32, #tpu.memory_space<vmem>>, %arg5: memref<32x96xf32, #tpu.memory_space<vmem>>, %arg6: memref<1x96xf32, #tpu.memory_space<vmem>>, %arg7: memref<32x32xf32, #tpu.memory_space<vmem>>, %arg8: memref<1x32xf32, #tpu.memory_space<vmem>>, %arg9: memref<32x32xf32, #tpu.memory_space<vmem>>, %arg10: memref<1x32xf32, #tpu.memory_space<vmem>>, %arg11: memref<32x64xf32, #tpu.memory_space<vmem>>, %arg12: memref<1x64xf32, #tpu.memory_space<vmem>>, %arg13: memref<32x32xf32, #tpu.memory_space<vmem>>, %arg14: memref<1x32xf32, #tpu.memory_space<vmem>>, %arg15: memref<32x64xf32, #tpu.memory_space<vmem>>, %arg16: memref<1x64xf32, #tpu.memory_space<vmem>>, %arg17: memref<64x32xf32, #tpu.memory_space<vmem>>, %arg18: memref<1x32xf32, #tpu.memory_space<vmem>>, %arg19: memref<1x8x32xf32, #tpu.memory_space<vmem>>, %arg20: memref<1x4x8x8xf32, #tpu.memory_space<vmem>>, %arg21: memref<1x4x8x8xf32, #tpu.memory_space<vmem>>) attributes {dimension_semantics = [#tpu.dimension_semantics<parallel>], iteration_bounds = array<i64: 2>, scalar_prefetch = 0 : i64, scratch_operands = 0 : i64, tpu.core_type = #tpu.core_type<tc>, window_params = [{transform_indices = @transform_0, window_bounds = array<i64: 1, 8, 32>}, {transform_indices = @transform_1, window_bounds = array<i64: 1, 8, 32>}, {transform_indices = @transform_2, window_bounds = array<i64: 1, 1, 8, 8>}, {transform_indices = @transform_3, window_bounds = array<i64: 1, 1, 1, 8>}, {pipeline_mode = #tpu.pipeline_mode<synchronous>, transform_indices = @transform_4, window_bounds = array<i64: 32, 96>}, {pipeline_mode = #tpu.pipeline_mode<synchronous>, transform_indices = @transform_5, window_bounds = array<i64: 1, 96>}, {pipeline_mode = #tpu.pipeline_mode<synchronous>, transform_indices = @transform_6, window_bounds = array<i64: 32, 32>}, {pipeline_mode = #tpu.pipeline_mode<synchronous>, transform_indices = @transform_7, window_bounds = array<i64: 1, 32>}, {pipeline_mode = #tpu.pipeline_mode<synchronous>, transform_indices = @transform_8, window_bounds = array<i64: 32, 32>}, {pipeline_mode = #tpu.pipeline_mode<synchronous>, transform_indices = @transform_9, window_bounds = array<i64: 1, 32>}, {pipeline_mode = #tpu.pipeline_mode<synchronous>, transform_indices = @transform_10, window_bounds = array<i64: 32, 64>}, {pipeline_mode = #tpu.pipeline_mode<synchronous>, transform_indices = @transform_11, window_bounds = array<i64: 1, 64>}, {pipeline_mode = #tpu.pipeline_mode<synchronous>, transform_indices = @transform_12, window_bounds = array<i64: 32, 32>}, {pipeline_mode = #tpu.pipeline_mode<synchronous>, transform_indices = @transform_13, window_bounds = array<i64: 1, 32>}, {pipeline_mode = #tpu.pipeline_mode<synchronous>, transform_indices = @transform_14, window_bounds = array<i64: 32, 64>}, {pipeline_mode = #tpu.pipeline_mode<synchronous>, transform_indices = @transform_15, window_bounds = array<i64: 1, 64>}, {pipeline_mode = #tpu.pipeline_mode<synchronous>, transform_indices = @transform_16, window_bounds = array<i64: 64, 32>}, {pipeline_mode = #tpu.pipeline_mode<synchronous>, transform_indices = @transform_17, window_bounds = array<i64: 1, 32>}, {transform_indices = @transform_18, window_bounds = array<i64: 1, 8, 32>}, {transform_indices = @transform_19, window_bounds = array<i64: 1, 4, 8, 8>}, {transform_indices = @transform_20, window_bounds = array<i64: 1, 4, 8, 8>}]} {
    %c0 = arith.constant 0 : index
    %c0_0 = arith.constant 0 : index
    %c0_1 = arith.constant 0 : index
    %0 = vector.load %arg1[%c0, %c0_0, %c0_1] : memref<1x8x32xf32, #tpu.memory_space<vmem>>, vector<1x8x32xf32>
    %1 = vector.shape_cast %0 : vector<1x8x32xf32> to vector<8x32xf32>
    %c0_2 = arith.constant 0 : index
    %c0_3 = arith.constant 0 : index
    %c0_4 = arith.constant 0 : index
    %2 = vector.load %arg2[%c0_2, %c0_3, %c0_4] : memref<1x8x32xf32, #tpu.memory_space<vmem>>, vector<1x8x32xf32>
    %3 = vector.shape_cast %2 : vector<1x8x32xf32> to vector<8x32xf32>
    %c0_5 = arith.constant 0 : index
    %c0_6 = arith.constant 0 : index
    %c0_7 = arith.constant 0 : index
    %c0_8 = arith.constant 0 : index
    %4 = vector.load %arg3[%c0_5, %c0_6, %c0_7, %c0_8] : memref<1x1x8x8xf32, #tpu.memory_space<vmem>>, vector<1x1x8x8xf32>
    %5 = vector.shape_cast %4 : vector<1x1x8x8xf32> to vector<8x8xf32>
    %c0_9 = arith.constant 0 : index
    %c0_10 = arith.constant 0 : index
    %c0_11 = arith.constant 0 : index
    %c0_12 = arith.constant 0 : index
    %6 = vector.load %arg4[%c0_9, %c0_10, %c0_11, %c0_12] : memref<1x1x1x8xf32, #tpu.memory_space<vmem>>, vector<1x1x1x8xf32>
    %7 = vector.shape_cast %6 : vector<1x1x1x8xf32> to vector<1x8xf32>
    %c0_13 = arith.constant 0 : index
    %c0_14 = arith.constant 0 : index
    %8 = vector.load %arg5[%c0_13, %c0_14] : memref<32x96xf32, #tpu.memory_space<vmem>>, vector<32x96xf32>
    %cst = arith.constant dense<0.000000e+00> : vector<8x96xf32>
    %9 = tpu.matmul %1, %8, %cst {dimension_numbers = #tpu.dot_dimension_numbers<[1], [0], [0], [1], [0, 0, 1, 1], [], []>} : vector<8x32xf32>, vector<32x96xf32>, vector<8x96xf32> -> vector<8x96xf32>
    %c0_15 = arith.constant 0 : index
    %c0_16 = arith.constant 0 : index
    %10 = vector.load %arg6[%c0_15, %c0_16] : memref<1x96xf32, #tpu.memory_space<vmem>>, vector<1x96xf32>
    %11 = vector.broadcast %10 : vector<1x96xf32> to vector<8x96xf32>
    %12 = arith.addf %9, %11 : vector<8x96xf32>
    %13 = vector.extract_strided_slice %12 {offsets = [0, 0], sizes = [8, 32], strides = [1, 1]} : vector<8x96xf32> to vector<8x32xf32>
    %14 = vector.extract_strided_slice %12 {offsets = [0, 32], sizes = [8, 32], strides = [1, 1]} : vector<8x96xf32> to vector<8x32xf32>
    %15 = vector.extract_strided_slice %12 {offsets = [0, 64], sizes = [8, 32], strides = [1, 1]} : vector<8x96xf32> to vector<8x32xf32>
    %16 = vector.extract_strided_slice %13 {offsets = [0, 0], sizes = [8, 8], strides = [1, 1]} : vector<8x32xf32> to vector<8x8xf32>
    %cst_17 = arith.constant 0.353553385 : f32
    %17 = vector.broadcast %cst_17 : f32 to vector<8x8xf32>
    %18 = arith.mulf %16, %17 : vector<8x8xf32>
    %19 = vector.extract_strided_slice %14 {offsets = [0, 0], sizes = [8, 8], strides = [1, 1]} : vector<8x32xf32> to vector<8x8xf32>
    %20 = vector.extract_strided_slice %15 {offsets = [0, 0], sizes = [8, 8], strides = [1, 1]} : vector<8x32xf32> to vector<8x8xf32>
    %cst_18 = arith.constant dense<0.000000e+00> : vector<8x8xf32>
    %21 = tpu.matmul %18, %19, %cst_18 {dimension_numbers = #tpu.dot_dimension_numbers<[1], [1], [0], [0], [0, 0, 1, 0], [], []>} : vector<8x8xf32>, vector<8x8xf32>, vector<8x8xf32> -> vector<8x8xf32>
    %cst_19 = arith.constant -1.000000e+09 : f32
    %22 = vector.broadcast %cst_19 : f32 to vector<8x8xf32>
    %23 = arith.mulf %5, %22 : vector<8x8xf32>
    %24 = arith.addf %21, %23 : vector<8x8xf32>
    %cst_20 = arith.constant dense<0xFF800000> : vector<8xf32>
    %25 = vector.multi_reduction <maximumf>, %24, %cst_20 [1] : vector<8x8xf32> to vector<8xf32>
    %26 = vector.shape_cast %25 : vector<8xf32> to vector<8x1xf32>
    %27 = vector.broadcast %26 : vector<8x1xf32> to vector<8x8xf32>
    %28 = arith.subf %24, %27 : vector<8x8xf32>
    %29 = math.exp %28 : vector<8x8xf32>
    %cst_21 = arith.constant dense<0.000000e+00> : vector<8xf32>
    %30 = vector.multi_reduction <add>, %29, %cst_21 [1] : vector<8x8xf32> to vector<8xf32>
    %31 = vector.shape_cast %30 : vector<8xf32> to vector<8x1xf32>
    %32 = vector.broadcast %31 : vector<8x1xf32> to vector<8x8xf32>
    %33 = arith.divf %29, %32 : vector<8x8xf32>
    %c0_22 = arith.constant 0 : index
    %c0_23 = arith.constant 0 : index
    %c0_24 = arith.constant 0 : index
    %c0_25 = arith.constant 0 : index
    %34 = vector.load %arg20[%c0_22, %c0_23, %c0_24, %c0_25] : memref<1x4x8x8xf32, #tpu.memory_space<vmem>>, vector<1x1x8x8xf32>
    %35 = vector.shape_cast %34 : vector<1x1x8x8xf32> to vector<8x8xf32>
    %36 = vector.shape_cast %33 : vector<8x8xf32> to vector<1x1x8x8xf32>
    tpu.vector_store %arg20[%c0_22, %c0_23, %c0_24, %c0_25], %36 {strides = array<i32>} : memref<1x4x8x8xf32, #tpu.memory_space<vmem>>, vector<1x1x8x8xf32>,
    %cst_26 = arith.constant dense<0.000000e+00> : vector<8x8xf32>
    %37 = tpu.matmul %33, %20, %cst_26 {dimension_numbers = #tpu.dot_dimension_numbers<[1], [0], [0], [1], [0, 0, 1, 1], [], []>} : vector<8x8xf32>, vector<8x8xf32>, vector<8x8xf32> -> vector<8x8xf32>
    %c0_27 = arith.constant 0 : index
    %c0_28 = arith.constant 0 : index
    %38 = vector.load %arg7[%c0_27, %c0_28] : memref<32x32xf32, #tpu.memory_space<vmem>>, vector<8x32xf32>
    %cst_29 = arith.constant dense<0.000000e+00> : vector<8x32xf32>
    %39 = tpu.matmul %37, %38, %cst_29 {dimension_numbers = #tpu.dot_dimension_numbers<[1], [0], [0], [1], [0, 0, 1, 1], [], []>} : vector<8x8xf32>, vector<8x32xf32>, vector<8x32xf32> -> vector<8x32xf32>
    %40 = vector.extract_strided_slice %13 {offsets = [0, 8], sizes = [8, 8], strides = [1, 1]} : vector<8x32xf32> to vector<8x8xf32>
    %cst_30 = arith.constant 0.353553385 : f32
    %41 = vector.broadcast %cst_30 : f32 to vector<8x8xf32>
    %42 = arith.mulf %40, %41 : vector<8x8xf32>
    %43 = vector.extract_strided_slice %14 {offsets = [0, 8], sizes = [8, 8], strides = [1, 1]} : vector<8x32xf32> to vector<8x8xf32>
    %44 = vector.extract_strided_slice %15 {offsets = [0, 8], sizes = [8, 8], strides = [1, 1]} : vector<8x32xf32> to vector<8x8xf32>
    %cst_31 = arith.constant dense<0.000000e+00> : vector<8x8xf32>
    %45 = tpu.matmul %42, %43, %cst_31 {dimension_numbers = #tpu.dot_dimension_numbers<[1], [1], [0], [0], [0, 0, 1, 0], [], []>} : vector<8x8xf32>, vector<8x8xf32>, vector<8x8xf32> -> vector<8x8xf32>
    %cst_32 = arith.constant -1.000000e+09 : f32
    %46 = vector.broadcast %cst_32 : f32 to vector<8x8xf32>
    %47 = arith.mulf %5, %46 : vector<8x8xf32>
    %48 = arith.addf %45, %47 : vector<8x8xf32>
    %cst_33 = arith.constant dense<0xFF800000> : vector<8xf32>
    %49 = vector.multi_reduction <maximumf>, %48, %cst_33 [1] : vector<8x8xf32> to vector<8xf32>
    %50 = vector.shape_cast %49 : vector<8xf32> to vector<8x1xf32>
    %51 = vector.broadcast %50 : vector<8x1xf32> to vector<8x8xf32>
    %52 = arith.subf %48, %51 : vector<8x8xf32>
    %53 = math.exp %52 : vector<8x8xf32>
    %cst_34 = arith.constant dense<0.000000e+00> : vector<8xf32>
    %54 = vector.multi_reduction <add>, %53, %cst_34 [1] : vector<8x8xf32> to vector<8xf32>
    %55 = vector.shape_cast %54 : vector<8xf32> to vector<8x1xf32>
    %56 = vector.broadcast %55 : vector<8x1xf32> to vector<8x8xf32>
    %57 = arith.divf %53, %56 : vector<8x8xf32>
    %c0_35 = arith.constant 0 : index
    %c1 = arith.constant 1 : index
    %c0_36 = arith.constant 0 : index
    %c0_37 = arith.constant 0 : index
    %58 = vector.load %arg20[%c0_35, %c1, %c0_36, %c0_37] : memref<1x4x8x8xf32, #tpu.memory_space<vmem>>, vector<1x1x8x8xf32>
    %59 = vector.shape_cast %58 : vector<1x1x8x8xf32> to vector<8x8xf32>
    %60 = vector.shape_cast %57 : vector<8x8xf32> to vector<1x1x8x8xf32>
    tpu.vector_store %arg20[%c0_35, %c1, %c0_36, %c0_37], %60 {strides = array<i32>} : memref<1x4x8x8xf32, #tpu.memory_space<vmem>>, vector<1x1x8x8xf32>,
    %cst_38 = arith.constant dense<0.000000e+00> : vector<8x8xf32>
    %61 = tpu.matmul %57, %44, %cst_38 {dimension_numbers = #tpu.dot_dimension_numbers<[1], [0], [0], [1], [0, 0, 1, 1], [], []>} : vector<8x8xf32>, vector<8x8xf32>, vector<8x8xf32> -> vector<8x8xf32>
    %c8 = arith.constant 8 : index
    %c0_39 = arith.constant 0 : index
    %62 = vector.load %arg7[%c8, %c0_39] : memref<32x32xf32, #tpu.memory_space<vmem>>, vector<8x32xf32>
    %cst_40 = arith.constant dense<0.000000e+00> : vector<8x32xf32>
    %63 = tpu.matmul %61, %62, %cst_40 {dimension_numbers = #tpu.dot_dimension_numbers<[1], [0], [0], [1], [0, 0, 1, 1], [], []>} : vector<8x8xf32>, vector<8x32xf32>, vector<8x32xf32> -> vector<8x32xf32>
    %64 = arith.addf %39, %63 : vector<8x32xf32>
    %65 = vector.extract_strided_slice %13 {offsets = [0, 16], sizes = [8, 8], strides = [1, 1]} : vector<8x32xf32> to vector<8x8xf32>
    %cst_41 = arith.constant 0.353553385 : f32
    %66 = vector.broadcast %cst_41 : f32 to vector<8x8xf32>
    %67 = arith.mulf %65, %66 : vector<8x8xf32>
    %68 = vector.extract_strided_slice %14 {offsets = [0, 16], sizes = [8, 8], strides = [1, 1]} : vector<8x32xf32> to vector<8x8xf32>
    %69 = vector.extract_strided_slice %15 {offsets = [0, 16], sizes = [8, 8], strides = [1, 1]} : vector<8x32xf32> to vector<8x8xf32>
    %cst_42 = arith.constant dense<0.000000e+00> : vector<8x8xf32>
    %70 = tpu.matmul %67, %68, %cst_42 {dimension_numbers = #tpu.dot_dimension_numbers<[1], [1], [0], [0], [0, 0, 1, 0], [], []>} : vector<8x8xf32>, vector<8x8xf32>, vector<8x8xf32> -> vector<8x8xf32>
    %cst_43 = arith.constant -1.000000e+09 : f32
    %71 = vector.broadcast %cst_43 : f32 to vector<8x8xf32>
    %72 = arith.mulf %5, %71 : vector<8x8xf32>
    %73 = arith.addf %70, %72 : vector<8x8xf32>
    %cst_44 = arith.constant dense<0xFF800000> : vector<8xf32>
    %74 = vector.multi_reduction <maximumf>, %73, %cst_44 [1] : vector<8x8xf32> to vector<8xf32>
    %75 = vector.shape_cast %74 : vector<8xf32> to vector<8x1xf32>
    %76 = vector.broadcast %75 : vector<8x1xf32> to vector<8x8xf32>
    %77 = arith.subf %73, %76 : vector<8x8xf32>
    %78 = math.exp %77 : vector<8x8xf32>
    %cst_45 = arith.constant dense<0.000000e+00> : vector<8xf32>
    %79 = vector.multi_reduction <add>, %78, %cst_45 [1] : vector<8x8xf32> to vector<8xf32>
    %80 = vector.shape_cast %79 : vector<8xf32> to vector<8x1xf32>
    %81 = vector.broadcast %80 : vector<8x1xf32> to vector<8x8xf32>
    %82 = arith.divf %78, %81 : vector<8x8xf32>
    %c0_46 = arith.constant 0 : index
    %c2 = arith.constant 2 : index
    %c0_47 = arith.constant 0 : index
    %c0_48 = arith.constant 0 : index
    %83 = vector.load %arg20[%c0_46, %c2, %c0_47, %c0_48] : memref<1x4x8x8xf32, #tpu.memory_space<vmem>>, vector<1x1x8x8xf32>
    %84 = vector.shape_cast %83 : vector<1x1x8x8xf32> to vector<8x8xf32>
    %85 = vector.shape_cast %82 : vector<8x8xf32> to vector<1x1x8x8xf32>
    tpu.vector_store %arg20[%c0_46, %c2, %c0_47, %c0_48], %85 {strides = array<i32>} : memref<1x4x8x8xf32, #tpu.memory_space<vmem>>, vector<1x1x8x8xf32>,
    %cst_49 = arith.constant dense<0.000000e+00> : vector<8x8xf32>
    %86 = tpu.matmul %82, %69, %cst_49 {dimension_numbers = #tpu.dot_dimension_numbers<[1], [0], [0], [1], [0, 0, 1, 1], [], []>} : vector<8x8xf32>, vector<8x8xf32>, vector<8x8xf32> -> vector<8x8xf32>
    %c16 = arith.constant 16 : index
    %c0_50 = arith.constant 0 : index
    %87 = vector.load %arg7[%c16, %c0_50] : memref<32x32xf32, #tpu.memory_space<vmem>>, vector<8x32xf32>
    %cst_51 = arith.constant dense<0.000000e+00> : vector<8x32xf32>
    %88 = tpu.matmul %86, %87, %cst_51 {dimension_numbers = #tpu.dot_dimension_numbers<[1], [0], [0], [1], [0, 0, 1, 1], [], []>} : vector<8x8xf32>, vector<8x32xf32>, vector<8x32xf32> -> vector<8x32xf32>
    %89 = arith.addf %64, %88 : vector<8x32xf32>
    %90 = vector.extract_strided_slice %13 {offsets = [0, 24], sizes = [8, 8], strides = [1, 1]} : vector<8x32xf32> to vector<8x8xf32>
    %cst_52 = arith.constant 0.353553385 : f32
    %91 = vector.broadcast %cst_52 : f32 to vector<8x8xf32>
    %92 = arith.mulf %90, %91 : vector<8x8xf32>
    %93 = vector.extract_strided_slice %14 {offsets = [0, 24], sizes = [8, 8], strides = [1, 1]} : vector<8x32xf32> to vector<8x8xf32>
    %94 = vector.extract_strided_slice %15 {offsets = [0, 24], sizes = [8, 8], strides = [1, 1]} : vector<8x32xf32> to vector<8x8xf32>
    %cst_53 = arith.constant dense<0.000000e+00> : vector<8x8xf32>
    %95 = tpu.matmul %92, %93, %cst_53 {dimension_numbers = #tpu.dot_dimension_numbers<[1], [1], [0], [0], [0, 0, 1, 0], [], []>} : vector<8x8xf32>, vector<8x8xf32>, vector<8x8xf32> -> vector<8x8xf32>
    %cst_54 = arith.constant -1.000000e+09 : f32
    %96 = vector.broadcast %cst_54 : f32 to vector<8x8xf32>
    %97 = arith.mulf %5, %96 : vector<8x8xf32>
    %98 = arith.addf %95, %97 : vector<8x8xf32>
    %cst_55 = arith.constant dense<0xFF800000> : vector<8xf32>
    %99 = vector.multi_reduction <maximumf>, %98, %cst_55 [1] : vector<8x8xf32> to vector<8xf32>
    %100 = vector.shape_cast %99 : vector<8xf32> to vector<8x1xf32>
    %101 = vector.broadcast %100 : vector<8x1xf32> to vector<8x8xf32>
    %102 = arith.subf %98, %101 : vector<8x8xf32>
    %103 = math.exp %102 : vector<8x8xf32>
    %cst_56 = arith.constant dense<0.000000e+00> : vector<8xf32>
    %104 = vector.multi_reduction <add>, %103, %cst_56 [1] : vector<8x8xf32> to vector<8xf32>
    %105 = vector.shape_cast %104 : vector<8xf32> to vector<8x1xf32>
    %106 = vector.broadcast %105 : vector<8x1xf32> to vector<8x8xf32>
    %107 = arith.divf %103, %106 : vector<8x8xf32>
    %c0_57 = arith.constant 0 : index
    %c3 = arith.constant 3 : index
    %c0_58 = arith.constant 0 : index
    %c0_59 = arith.constant 0 : index
    %108 = vector.load %arg20[%c0_57, %c3, %c0_58, %c0_59] : memref<1x4x8x8xf32, #tpu.memory_space<vmem>>, vector<1x1x8x8xf32>
    %109 = vector.shape_cast %108 : vector<1x1x8x8xf32> to vector<8x8xf32>
    %110 = vector.shape_cast %107 : vector<8x8xf32> to vector<1x1x8x8xf32>
    tpu.vector_store %arg20[%c0_57, %c3, %c0_58, %c0_59], %110 {strides = array<i32>} : memref<1x4x8x8xf32, #tpu.memory_space<vmem>>, vector<1x1x8x8xf32>,
    %cst_60 = arith.constant dense<0.000000e+00> : vector<8x8xf32>
    %111 = tpu.matmul %107, %94, %cst_60 {dimension_numbers = #tpu.dot_dimension_numbers<[1], [0], [0], [1], [0, 0, 1, 1], [], []>} : vector<8x8xf32>, vector<8x8xf32>, vector<8x8xf32> -> vector<8x8xf32>
    %c24 = arith.constant 24 : index
    %c0_61 = arith.constant 0 : index
    %112 = vector.load %arg7[%c24, %c0_61] : memref<32x32xf32, #tpu.memory_space<vmem>>, vector<8x32xf32>
    %cst_62 = arith.constant dense<0.000000e+00> : vector<8x32xf32>
    %113 = tpu.matmul %111, %112, %cst_62 {dimension_numbers = #tpu.dot_dimension_numbers<[1], [0], [0], [1], [0, 0, 1, 1], [], []>} : vector<8x8xf32>, vector<8x32xf32>, vector<8x32xf32> -> vector<8x32xf32>
    %114 = arith.addf %89, %113 : vector<8x32xf32>
    %c0_63 = arith.constant 0 : index
    %c0_64 = arith.constant 0 : index
    %115 = vector.load %arg8[%c0_63, %c0_64] : memref<1x32xf32, #tpu.memory_space<vmem>>, vector<1x32xf32>
    %116 = vector.broadcast %115 : vector<1x32xf32> to vector<8x32xf32>
    %117 = arith.addf %114, %116 : vector<8x32xf32>
    %c0_65 = arith.constant 0 : index
    %c0_66 = arith.constant 0 : index
    %118 = vector.load %arg9[%c0_65, %c0_66] : memref<32x32xf32, #tpu.memory_space<vmem>>, vector<32x32xf32>
    %cst_67 = arith.constant dense<0.000000e+00> : vector<8x32xf32>
    %119 = tpu.matmul %117, %118, %cst_67 {dimension_numbers = #tpu.dot_dimension_numbers<[1], [0], [0], [1], [0, 0, 1, 1], [], []>} : vector<8x32xf32>, vector<32x32xf32>, vector<8x32xf32> -> vector<8x32xf32>
    %c0_68 = arith.constant 0 : index
    %c0_69 = arith.constant 0 : index
    %120 = vector.load %arg10[%c0_68, %c0_69] : memref<1x32xf32, #tpu.memory_space<vmem>>, vector<1x32xf32>
    %121 = vector.broadcast %120 : vector<1x32xf32> to vector<8x32xf32>
    %122 = arith.addf %119, %121 : vector<8x32xf32>
    %c0_70 = arith.constant 0 : index
    %c0_71 = arith.constant 0 : index
    %123 = vector.load %arg11[%c0_70, %c0_71] : memref<32x64xf32, #tpu.memory_space<vmem>>, vector<32x64xf32>
    %cst_72 = arith.constant dense<0.000000e+00> : vector<8x64xf32>
    %124 = tpu.matmul %3, %123, %cst_72 {dimension_numbers = #tpu.dot_dimension_numbers<[1], [0], [0], [1], [0, 0, 1, 1], [], []>} : vector<8x32xf32>, vector<32x64xf32>, vector<8x64xf32> -> vector<8x64xf32>
    %c0_73 = arith.constant 0 : index
    %c0_74 = arith.constant 0 : index
    %125 = vector.load %arg12[%c0_73, %c0_74] : memref<1x64xf32, #tpu.memory_space<vmem>>, vector<1x64xf32>
    %126 = vector.broadcast %125 : vector<1x64xf32> to vector<8x64xf32>
    %127 = arith.addf %124, %126 : vector<8x64xf32>
    %128 = vector.extract_strided_slice %127 {offsets = [0, 0], sizes = [8, 32], strides = [1, 1]} : vector<8x64xf32> to vector<8x32xf32>
    %129 = vector.extract_strided_slice %127 {offsets = [0, 32], sizes = [8, 32], strides = [1, 1]} : vector<8x64xf32> to vector<8x32xf32>
    %130 = vector.extract_strided_slice %122 {offsets = [0, 0], sizes = [8, 8], strides = [1, 1]} : vector<8x32xf32> to vector<8x8xf32>
    %cst_75 = arith.constant 0.353553385 : f32
    %131 = vector.broadcast %cst_75 : f32 to vector<8x8xf32>
    %132 = arith.mulf %130, %131 : vector<8x8xf32>
    %133 = vector.extract_strided_slice %128 {offsets = [0, 0], sizes = [8, 8], strides = [1, 1]} : vector<8x32xf32> to vector<8x8xf32>
    %134 = vector.extract_strided_slice %129 {offsets = [0, 0], sizes = [8, 8], strides = [1, 1]} : vector<8x32xf32> to vector<8x8xf32>
    %cst_76 = arith.constant dense<0.000000e+00> : vector<8x8xf32>
    %135 = tpu.matmul %132, %133, %cst_76 {dimension_numbers = #tpu.dot_dimension_numbers<[1], [1], [0], [0], [0, 0, 1, 0], [], []>} : vector<8x8xf32>, vector<8x8xf32>, vector<8x8xf32> -> vector<8x8xf32>
    %cst_77 = arith.constant -1.000000e+09 : f32
    %136 = vector.broadcast %cst_77 : f32 to vector<1x8xf32>
    %137 = arith.mulf %7, %136 : vector<1x8xf32>
    %138 = vector.broadcast %137 : vector<1x8xf32> to vector<8x8xf32>
    %139 = arith.addf %135, %138 : vector<8x8xf32>
    %cst_78 = arith.constant dense<0xFF800000> : vector<8xf32>
    %140 = vector.multi_reduction <maximumf>, %139, %cst_78 [1] : vector<8x8xf32> to vector<8xf32>
    %141 = vector.shape_cast %140 : vector<8xf32> to vector<8x1xf32>
    %142 = vector.broadcast %141 : vector<8x1xf32> to vector<8x8xf32>
    %143 = arith.subf %139, %142 : vector<8x8xf32>
    %144 = math.exp %143 : vector<8x8xf32>
    %cst_79 = arith.constant dense<0.000000e+00> : vector<8xf32>
    %145 = vector.multi_reduction <add>, %144, %cst_79 [1] : vector<8x8xf32> to vector<8xf32>
    %146 = vector.shape_cast %145 : vector<8xf32> to vector<8x1xf32>
    %147 = vector.broadcast %146 : vector<8x1xf32> to vector<8x8xf32>
    %148 = arith.divf %144, %147 : vector<8x8xf32>
    %c0_80 = arith.constant 0 : index
    %c0_81 = arith.constant 0 : index
    %c0_82 = arith.constant 0 : index
    %c0_83 = arith.constant 0 : index
    %149 = vector.load %arg21[%c0_80, %c0_81, %c0_82, %c0_83] : memref<1x4x8x8xf32, #tpu.memory_space<vmem>>, vector<1x1x8x8xf32>
    %150 = vector.shape_cast %149 : vector<1x1x8x8xf32> to vector<8x8xf32>
    %151 = vector.shape_cast %148 : vector<8x8xf32> to vector<1x1x8x8xf32>
    tpu.vector_store %arg21[%c0_80, %c0_81, %c0_82, %c0_83], %151 {strides = array<i32>} : memref<1x4x8x8xf32, #tpu.memory_space<vmem>>, vector<1x1x8x8xf32>,
    %cst_84 = arith.constant dense<0.000000e+00> : vector<8x8xf32>
    %152 = tpu.matmul %148, %134, %cst_84 {dimension_numbers = #tpu.dot_dimension_numbers<[1], [0], [0], [1], [0, 0, 1, 1], [], []>} : vector<8x8xf32>, vector<8x8xf32>, vector<8x8xf32> -> vector<8x8xf32>
    %c0_85 = arith.constant 0 : index
    %c0_86 = arith.constant 0 : index
    %153 = vector.load %arg13[%c0_85, %c0_86] : memref<32x32xf32, #tpu.memory_space<vmem>>, vector<8x32xf32>
    %cst_87 = arith.constant dense<0.000000e+00> : vector<8x32xf32>
    %154 = tpu.matmul %152, %153, %cst_87 {dimension_numbers = #tpu.dot_dimension_numbers<[1], [0], [0], [1], [0, 0, 1, 1], [], []>} : vector<8x8xf32>, vector<8x32xf32>, vector<8x32xf32> -> vector<8x32xf32>
    %155 = vector.extract_strided_slice %122 {offsets = [0, 8], sizes = [8, 8], strides = [1, 1]} : vector<8x32xf32> to vector<8x8xf32>
    %cst_88 = arith.constant 0.353553385 : f32
    %156 = vector.broadcast %cst_88 : f32 to vector<8x8xf32>
    %157 = arith.mulf %155, %156 : vector<8x8xf32>
    %158 = vector.extract_strided_slice %128 {offsets = [0, 8], sizes = [8, 8], strides = [1, 1]} : vector<8x32xf32> to vector<8x8xf32>
    %159 = vector.extract_strided_slice %129 {offsets = [0, 8], sizes = [8, 8], strides = [1, 1]} : vector<8x32xf32> to vector<8x8xf32>
    %cst_89 = arith.constant dense<0.000000e+00> : vector<8x8xf32>
    %160 = tpu.matmul %157, %158, %cst_89 {dimension_numbers = #tpu.dot_dimension_numbers<[1], [1], [0], [0], [0, 0, 1, 0], [], []>} : vector<8x8xf32>, vector<8x8xf32>, vector<8x8xf32> -> vector<8x8xf32>
    %cst_90 = arith.constant -1.000000e+09 : f32
    %161 = vector.broadcast %cst_90 : f32 to vector<1x8xf32>
    %162 = arith.mulf %7, %161 : vector<1x8xf32>
    %163 = vector.broadcast %162 : vector<1x8xf32> to vector<8x8xf32>
    %164 = arith.addf %160, %163 : vector<8x8xf32>
    %cst_91 = arith.constant dense<0xFF800000> : vector<8xf32>
    %165 = vector.multi_reduction <maximumf>, %164, %cst_91 [1] : vector<8x8xf32> to vector<8xf32>
    %166 = vector.shape_cast %165 : vector<8xf32> to vector<8x1xf32>
    %167 = vector.broadcast %166 : vector<8x1xf32> to vector<8x8xf32>
    %168 = arith.subf %164, %167 : vector<8x8xf32>
    %169 = math.exp %168 : vector<8x8xf32>
    %cst_92 = arith.constant dense<0.000000e+00> : vector<8xf32>
    %170 = vector.multi_reduction <add>, %169, %cst_92 [1] : vector<8x8xf32> to vector<8xf32>
    %171 = vector.shape_cast %170 : vector<8xf32> to vector<8x1xf32>
    %172 = vector.broadcast %171 : vector<8x1xf32> to vector<8x8xf32>
    %173 = arith.divf %169, %172 : vector<8x8xf32>
    %c0_93 = arith.constant 0 : index
    %c1_94 = arith.constant 1 : index
    %c0_95 = arith.constant 0 : index
    %c0_96 = arith.constant 0 : index
    %174 = vector.load %arg21[%c0_93, %c1_94, %c0_95, %c0_96] : memref<1x4x8x8xf32, #tpu.memory_space<vmem>>, vector<1x1x8x8xf32>
    %175 = vector.shape_cast %174 : vector<1x1x8x8xf32> to vector<8x8xf32>
    %176 = vector.shape_cast %173 : vector<8x8xf32> to vector<1x1x8x8xf32>
    tpu.vector_store %arg21[%c0_93, %c1_94, %c0_95, %c0_96], %176 {strides = array<i32>} : memref<1x4x8x8xf32, #tpu.memory_space<vmem>>, vector<1x1x8x8xf32>,
    %cst_97 = arith.constant dense<0.000000e+00> : vector<8x8xf32>
    %177 = tpu.matmul %173, %159, %cst_97 {dimension_numbers = #tpu.dot_dimension_numbers<[1], [0], [0], [1], [0, 0, 1, 1], [], []>} : vector<8x8xf32>, vector<8x8xf32>, vector<8x8xf32> -> vector<8x8xf32>
    %c8_98 = arith.constant 8 : index
    %c0_99 = arith.constant 0 : index
    %178 = vector.load %arg13[%c8_98, %c0_99] : memref<32x32xf32, #tpu.memory_space<vmem>>, vector<8x32xf32>
    %cst_100 = arith.constant dense<0.000000e+00> : vector<8x32xf32>
    %179 = tpu.matmul %177, %178, %cst_100 {dimension_numbers = #tpu.dot_dimension_numbers<[1], [0], [0], [1], [0, 0, 1, 1], [], []>} : vector<8x8xf32>, vector<8x32xf32>, vector<8x32xf32> -> vector<8x32xf32>
    %180 = arith.addf %154, %179 : vector<8x32xf32>
    %181 = vector.extract_strided_slice %122 {offsets = [0, 16], sizes = [8, 8], strides = [1, 1]} : vector<8x32xf32> to vector<8x8xf32>
    %cst_101 = arith.constant 0.353553385 : f32
    %182 = vector.broadcast %cst_101 : f32 to vector<8x8xf32>
    %183 = arith.mulf %181, %182 : vector<8x8xf32>
    %184 = vector.extract_strided_slice %128 {offsets = [0, 16], sizes = [8, 8], strides = [1, 1]} : vector<8x32xf32> to vector<8x8xf32>
    %185 = vector.extract_strided_slice %129 {offsets = [0, 16], sizes = [8, 8], strides = [1, 1]} : vector<8x32xf32> to vector<8x8xf32>
    %cst_102 = arith.constant dense<0.000000e+00> : vector<8x8xf32>
    %186 = tpu.matmul %183, %184, %cst_102 {dimension_numbers = #tpu.dot_dimension_numbers<[1], [1], [0], [0], [0, 0, 1, 0], [], []>} : vector<8x8xf32>, vector<8x8xf32>, vector<8x8xf32> -> vector<8x8xf32>
    %cst_103 = arith.constant -1.000000e+09 : f32
    %187 = vector.broadcast %cst_103 : f32 to vector<1x8xf32>
    %188 = arith.mulf %7, %187 : vector<1x8xf32>
    %189 = vector.broadcast %188 : vector<1x8xf32> to vector<8x8xf32>
    %190 = arith.addf %186, %189 : vector<8x8xf32>
    %cst_104 = arith.constant dense<0xFF800000> : vector<8xf32>
    %191 = vector.multi_reduction <maximumf>, %190, %cst_104 [1] : vector<8x8xf32> to vector<8xf32>
    %192 = vector.shape_cast %191 : vector<8xf32> to vector<8x1xf32>
    %193 = vector.broadcast %192 : vector<8x1xf32> to vector<8x8xf32>
    %194 = arith.subf %190, %193 : vector<8x8xf32>
    %195 = math.exp %194 : vector<8x8xf32>
    %cst_105 = arith.constant dense<0.000000e+00> : vector<8xf32>
    %196 = vector.multi_reduction <add>, %195, %cst_105 [1] : vector<8x8xf32> to vector<8xf32>
    %197 = vector.shape_cast %196 : vector<8xf32> to vector<8x1xf32>
    %198 = vector.broadcast %197 : vector<8x1xf32> to vector<8x8xf32>
    %199 = arith.divf %195, %198 : vector<8x8xf32>
    %c0_106 = arith.constant 0 : index
    %c2_107 = arith.constant 2 : index
    %c0_108 = arith.constant 0 : index
    %c0_109 = arith.constant 0 : index
    %200 = vector.load %arg21[%c0_106, %c2_107, %c0_108, %c0_109] : memref<1x4x8x8xf32, #tpu.memory_space<vmem>>, vector<1x1x8x8xf32>
    %201 = vector.shape_cast %200 : vector<1x1x8x8xf32> to vector<8x8xf32>
    %202 = vector.shape_cast %199 : vector<8x8xf32> to vector<1x1x8x8xf32>
    tpu.vector_store %arg21[%c0_106, %c2_107, %c0_108, %c0_109], %202 {strides = array<i32>} : memref<1x4x8x8xf32, #tpu.memory_space<vmem>>, vector<1x1x8x8xf32>,
    %cst_110 = arith.constant dense<0.000000e+00> : vector<8x8xf32>
    %203 = tpu.matmul %199, %185, %cst_110 {dimension_numbers = #tpu.dot_dimension_numbers<[1], [0], [0], [1], [0, 0, 1, 1], [], []>} : vector<8x8xf32>, vector<8x8xf32>, vector<8x8xf32> -> vector<8x8xf32>
    %c16_111 = arith.constant 16 : index
    %c0_112 = arith.constant 0 : index
    %204 = vector.load %arg13[%c16_111, %c0_112] : memref<32x32xf32, #tpu.memory_space<vmem>>, vector<8x32xf32>
    %cst_113 = arith.constant dense<0.000000e+00> : vector<8x32xf32>
    %205 = tpu.matmul %203, %204, %cst_113 {dimension_numbers = #tpu.dot_dimension_numbers<[1], [0], [0], [1], [0, 0, 1, 1], [], []>} : vector<8x8xf32>, vector<8x32xf32>, vector<8x32xf32> -> vector<8x32xf32>
    %206 = arith.addf %180, %205 : vector<8x32xf32>
    %207 = vector.extract_strided_slice %122 {offsets = [0, 24], sizes = [8, 8], strides = [1, 1]} : vector<8x32xf32> to vector<8x8xf32>
    %cst_114 = arith.constant 0.353553385 : f32
    %208 = vector.broadcast %cst_114 : f32 to vector<8x8xf32>
    %209 = arith.mulf %207, %208 : vector<8x8xf32>
    %210 = vector.extract_strided_slice %128 {offsets = [0, 24], sizes = [8, 8], strides = [1, 1]} : vector<8x32xf32> to vector<8x8xf32>
    %211 = vector.extract_strided_slice %129 {offsets = [0, 24], sizes = [8, 8], strides = [1, 1]} : vector<8x32xf32> to vector<8x8xf32>
    %cst_115 = arith.constant dense<0.000000e+00> : vector<8x8xf32>
    %212 = tpu.matmul %209, %210, %cst_115 {dimension_numbers = #tpu.dot_dimension_numbers<[1], [1], [0], [0], [0, 0, 1, 0], [], []>} : vector<8x8xf32>, vector<8x8xf32>, vector<8x8xf32> -> vector<8x8xf32>
    %cst_116 = arith.constant -1.000000e+09 : f32
    %213 = vector.broadcast %cst_116 : f32 to vector<1x8xf32>
    %214 = arith.mulf %7, %213 : vector<1x8xf32>
    %215 = vector.broadcast %214 : vector<1x8xf32> to vector<8x8xf32>
    %216 = arith.addf %212, %215 : vector<8x8xf32>
    %cst_117 = arith.constant dense<0xFF800000> : vector<8xf32>
    %217 = vector.multi_reduction <maximumf>, %216, %cst_117 [1] : vector<8x8xf32> to vector<8xf32>
    %218 = vector.shape_cast %217 : vector<8xf32> to vector<8x1xf32>
    %219 = vector.broadcast %218 : vector<8x1xf32> to vector<8x8xf32>
    %220 = arith.subf %216, %219 : vector<8x8xf32>
    %221 = math.exp %220 : vector<8x8xf32>
    %cst_118 = arith.constant dense<0.000000e+00> : vector<8xf32>
    %222 = vector.multi_reduction <add>, %221, %cst_118 [1] : vector<8x8xf32> to vector<8xf32>
    %223 = vector.shape_cast %222 : vector<8xf32> to vector<8x1xf32>
    %224 = vector.broadcast %223 : vector<8x1xf32> to vector<8x8xf32>
    %225 = arith.divf %221, %224 : vector<8x8xf32>
    %c0_119 = arith.constant 0 : index
    %c3_120 = arith.constant 3 : index
    %c0_121 = arith.constant 0 : index
    %c0_122 = arith.constant 0 : index
    %226 = vector.load %arg21[%c0_119, %c3_120, %c0_121, %c0_122] : memref<1x4x8x8xf32, #tpu.memory_space<vmem>>, vector<1x1x8x8xf32>
    %227 = vector.shape_cast %226 : vector<1x1x8x8xf32> to vector<8x8xf32>
    %228 = vector.shape_cast %225 : vector<8x8xf32> to vector<1x1x8x8xf32>
    tpu.vector_store %arg21[%c0_119, %c3_120, %c0_121, %c0_122], %228 {strides = array<i32>} : memref<1x4x8x8xf32, #tpu.memory_space<vmem>>, vector<1x1x8x8xf32>,
    %cst_123 = arith.constant dense<0.000000e+00> : vector<8x8xf32>
    %229 = tpu.matmul %225, %211, %cst_123 {dimension_numbers = #tpu.dot_dimension_numbers<[1], [0], [0], [1], [0, 0, 1, 1], [], []>} : vector<8x8xf32>, vector<8x8xf32>, vector<8x8xf32> -> vector<8x8xf32>
    %c24_124 = arith.constant 24 : index
    %c0_125 = arith.constant 0 : index
    %230 = vector.load %arg13[%c24_124, %c0_125] : memref<32x32xf32, #tpu.memory_space<vmem>>, vector<8x32xf32>
    %cst_126 = arith.constant dense<0.000000e+00> : vector<8x32xf32>
    %231 = tpu.matmul %229, %230, %cst_126 {dimension_numbers = #tpu.dot_dimension_numbers<[1], [0], [0], [1], [0, 0, 1, 1], [], []>} : vector<8x8xf32>, vector<8x32xf32>, vector<8x32xf32> -> vector<8x32xf32>
    %232 = arith.addf %206, %231 : vector<8x32xf32>
    %c0_127 = arith.constant 0 : index
    %c0_128 = arith.constant 0 : index
    %233 = vector.load %arg14[%c0_127, %c0_128] : memref<1x32xf32, #tpu.memory_space<vmem>>, vector<1x32xf32>
    %234 = vector.broadcast %233 : vector<1x32xf32> to vector<8x32xf32>
    %235 = arith.addf %232, %234 : vector<8x32xf32>
    %c0_129 = arith.constant 0 : index
    %c0_130 = arith.constant 0 : index
    %236 = vector.load %arg15[%c0_129, %c0_130] : memref<32x64xf32, #tpu.memory_space<vmem>>, vector<32x64xf32>
    %cst_131 = arith.constant dense<0.000000e+00> : vector<8x64xf32>
    %237 = tpu.matmul %235, %236, %cst_131 {dimension_numbers = #tpu.dot_dimension_numbers<[1], [0], [0], [1], [0, 0, 1, 1], [], []>} : vector<8x32xf32>, vector<32x64xf32>, vector<8x64xf32> -> vector<8x64xf32>
    %c0_132 = arith.constant 0 : index
    %c0_133 = arith.constant 0 : index
    %238 = vector.load %arg16[%c0_132, %c0_133] : memref<1x64xf32, #tpu.memory_space<vmem>>, vector<1x64xf32>
    %239 = vector.broadcast %238 : vector<1x64xf32> to vector<8x64xf32>
    %240 = arith.addf %237, %239 : vector<8x64xf32>
    %cst_134 = arith.constant 0.000000e+00 : f32
    %241 = vector.broadcast %cst_134 : f32 to vector<8x64xf32>
    %242 = arith.maximumf %240, %241 : vector<8x64xf32>
    %c0_135 = arith.constant 0 : index
    %c0_136 = arith.constant 0 : index
    %243 = vector.load %arg17[%c0_135, %c0_136] : memref<64x32xf32, #tpu.memory_space<vmem>>, vector<64x32xf32>
    %cst_137 = arith.constant dense<0.000000e+00> : vector<8x32xf32>
    %244 = tpu.matmul %242, %243, %cst_137 {dimension_numbers = #tpu.dot_dimension_numbers<[1], [0], [0], [1], [0, 0, 1, 1], [], []>} : vector<8x64xf32>, vector<64x32xf32>, vector<8x32xf32> -> vector<8x32xf32>
    %c0_138 = arith.constant 0 : index
    %c0_139 = arith.constant 0 : index
    %245 = vector.load %arg18[%c0_138, %c0_139] : memref<1x32xf32, #tpu.memory_space<vmem>>, vector<1x32xf32>
    %246 = vector.broadcast %245 : vector<1x32xf32> to vector<8x32xf32>
    %247 = arith.addf %244, %246 : vector<8x32xf32>
    %c0_140 = arith.constant 0 : index
    %c0_141 = arith.constant 0 : index
    %c0_142 = arith.constant 0 : index
    %248 = vector.load %arg19[%c0_140, %c0_141, %c0_142] : memref<1x8x32xf32, #tpu.memory_space<vmem>>, vector<1x8x32xf32>
    %249 = vector.shape_cast %248 : vector<1x8x32xf32> to vector<8x32xf32>
    %250 = vector.shape_cast %247 : vector<8x32xf32> to vector<1x8x32xf32>
    tpu.vector_store %arg19[%c0_140, %c0_141, %c0_142], %250 {strides = array<i32>} : memref<1x8x32xf32, #tpu.memory_space<vmem>>, vector<1x8x32xf32>,
    return
  }
  func.func @transform_0(%arg0: i32) -> (i32, i32, i32) {
    %c0_i32 = arith.constant 0 : i32
    %c0_i32_0 = arith.constant 0 : i32
    %c0_i32_1 = arith.constant 0 : i32
    return %arg0, %c0_i32, %c0_i32_0 : i32, i32, i32
  }
  func.func @transform_1(%arg0: i32) -> (i32, i32, i32) {
    %c0_i32 = arith.constant 0 : i32
    %c0_i32_0 = arith.constant 0 : i32
    %c0_i32_1 = arith.constant 0 : i32
    return %arg0, %c0_i32, %c0_i32_0 : i32, i32, i32
  }
  func.func @transform_2(%arg0: i32) -> (i32, i32, i32, i32) {
    %c0_i32 = arith.constant 0 : i32
    %c0_i32_0 = arith.constant 0 : i32
    %c0_i32_1 = arith.constant 0 : i32
    %c0_i32_2 = arith.constant 0 : i32
    return %arg0, %c0_i32, %c0_i32_0, %c0_i32_1 : i32, i32, i32, i32
  }
  func.func @transform_3(%arg0: i32) -> (i32, i32, i32, i32) {
    %c0_i32 = arith.constant 0 : i32
    %c0_i32_0 = arith.constant 0 : i32
    %c0_i32_1 = arith.constant 0 : i32
    %c0_i32_2 = arith.constant 0 : i32
    return %arg0, %c0_i32, %c0_i32_0, %c0_i32_1 : i32, i32, i32, i32
  }
  func.func @transform_4(%arg0: i32) -> (i32, i32) {
    %c0_i32 = arith.constant 0 : i32
    %c0_i32_0 = arith.constant 0 : i32
    %c0_i32_1 = arith.constant 0 : i32
    return %c0_i32, %c0_i32_0 : i32, i32
  }
  func.func @transform_5(%arg0: i32) -> (i32, i32) {
    %c0_i32 = arith.constant 0 : i32
    %c0_i32_0 = arith.constant 0 : i32
    %c0_i32_1 = arith.constant 0 : i32
    return %c0_i32, %c0_i32_0 : i32, i32
  }
  func.func @transform_6(%arg0: i32) -> (i32, i32) {
    %c0_i32 = arith.constant 0 : i32
    %c0_i32_0 = arith.constant 0 : i32
    %c0_i32_1 = arith.constant 0 : i32
    return %c0_i32, %c0_i32_0 : i32, i32
  }
  func.func @transform_7(%arg0: i32) -> (i32, i32) {
    %c0_i32 = arith.constant 0 : i32
    %c0_i32_0 = arith.constant 0 : i32
    %c0_i32_1 = arith.constant 0 : i32
    return %c0_i32, %c0_i32_0 : i32, i32
  }
  func.func @transform_8(%arg0: i32) -> (i32, i32) {
    %c0_i32 = arith.constant 0 : i32
    %c0_i32_0 = arith.constant 0 : i32
    %c0_i32_1 = arith.constant 0 : i32
    return %c0_i32, %c0_i32_0 : i32, i32
  }
  func.func @transform_9(%arg0: i32) -> (i32, i32) {
    %c0_i32 = arith.constant 0 : i32
    %c0_i32_0 = arith.constant 0 : i32
    %c0_i32_1 = arith.constant 0 : i32
    return %c0_i32, %c0_i32_0 : i32, i32
  }
  func.func @transform_10(%arg0: i32) -> (i32, i32) {
    %c0_i32 = arith.constant 0 : i32
    %c0_i32_0 = arith.constant 0 : i32
    %c0_i32_1 = arith.constant 0 : i32
    return %c0_i32, %c0_i32_0 : i32, i32
  }
  func.func @transform_11(%arg0: i32) -> (i32, i32) {
    %c0_i32 = arith.constant 0 : i32
    %c0_i32_0 = arith.constant 0 : i32
    %c0_i32_1 = arith.constant 0 : i32
    return %c0_i32, %c0_i32_0 : i32, i32
  }
  func.func @transform_12(%arg0: i32) -> (i32, i32) {
    %c0_i32 = arith.constant 0 : i32
    %c0_i32_0 = arith.constant 0 : i32
    %c0_i32_1 = arith.constant 0 : i32
    return %c0_i32, %c0_i32_0 : i32, i32
  }
  func.func @transform_13(%arg0: i32) -> (i32, i32) {
    %c0_i32 = arith.constant 0 : i32
    %c0_i32_0 = arith.constant 0 : i32
    %c0_i32_1 = arith.constant 0 : i32
    return %c0_i32, %c0_i32_0 : i32, i32
  }
  func.func @transform_14(%arg0: i32) -> (i32, i32) {
    %c0_i32 = arith.constant 0 : i32
    %c0_i32_0 = arith.constant 0 : i32
    %c0_i32_1 = arith.constant 0 : i32
    return %c0_i32, %c0_i32_0 : i32, i32
  }
  func.func @transform_15(%arg0: i32) -> (i32, i32) {
    %c0_i32 = arith.constant 0 : i32
    %c0_i32_0 = arith.constant 0 : i32
    %c0_i32_1 = arith.constant 0 : i32
    return %c0_i32, %c0_i32_0 : i32, i32
  }
  func.func @transform_16(%arg0: i32) -> (i32, i32) {
    %c0_i32 = arith.constant 0 : i32
    %c0_i32_0 = arith.constant 0 : i32
    %c0_i32_1 = arith.constant 0 : i32
    return %c0_i32, %c0_i32_0 : i32, i32
  }
  func.func @transform_17(%arg0: i32) -> (i32, i32) {
    %c0_i32 = arith.constant 0 : i32
    %c0_i32_0 = arith.constant 0 : i32
    %c0_i32_1 = arith.constant 0 : i32
    return %c0_i32, %c0_i32_0 : i32, i32
  }
  func.func @transform_18(%arg0: i32) -> (i32, i32, i32) {
    %c0_i32 = arith.constant 0 : i32
    %c0_i32_0 = arith.constant 0 : i32
    %c0_i32_1 = arith.constant 0 : i32
    return %arg0, %c0_i32, %c0_i32_0 : i32, i32, i32
  }
  func.func @transform_19(%arg0: i32) -> (i32, i32, i32, i32) {
    %c0_i32 = arith.constant 0 : i32
    %c0_i32_0 = arith.constant 0 : i32
    %c0_i32_1 = arith.constant 0 : i32
    %c0_i32_2 = arith.constant 0 : i32
    return %arg0, %c0_i32, %c0_i32_0, %c0_i32_1 : i32, i32, i32, i32
  }
  func.func @transform_20(%arg0: i32) -> (i32, i32, i32, i32) {
    %c0_i32 = arith.constant 0 : i32
    %c0_i32_0 = arith.constant 0 : i32
    %c0_i32_1 = arith.constant 0 : i32
    %c0_i32_2 = arith.constant 0 : i32
    return %arg0, %c0_i32, %c0_i32_0, %c0_i32_1 : i32, i32, i32, i32
  }
}

</mosaic_0001>

<bundles_post_ra>
// kernel: tpu_custom_call.1
= control target key start
LH: loop header
LB: loop body
LE: loop exit
PB: predicated region body
PF: predicated region fallthrough
CT: control target
= control target key end

     0   :  { %s5163_s0 = inlined_call_operand.hbm [shape: f32[2,8,32], index: 0, kind: input, shape index: {}]   ;;  %s5164_s1 = inlined_call_operand.hbm [shape: f32[2,8,32], index: 1, kind: input, shape index: {}]   ;;  %s5165_s2 = inlined_call_operand.hbm [shape: f32[2,1,8,8], index: 2, kind: input, shape index: {}]   ;;  %s5166_s3 = inlined_call_operand.vmem [shape: f32[2,1,1,8], index: 3, kind: input, shape index: {}]   ;;  %s5167_s4 = inlined_call_operand.vmem [shape: f32[32,96], index: 4, kind: input, shape index: {}]   ;;  %s5168_s5 = inlined_call_operand.vmem [shape: f32[1,96], index: 5, kind: input, shape index: {}]   ;;  %s5169_s6 = inlined_call_operand.vmem [shape: f32[32,32], index: 6, kind: input, shape index: {}]   ;;  %s5170_s7 = inlined_call_operand.vmem [shape: f32[1,32], index: 7, kind: input, shape index: {}]   ;;  %s5171_s8 = inlined_call_operand.vmem [shape: f32[32,32], index: 8, kind: input, shape index: {}]   ;;  %s5172_s9 = inlined_call_operand.vmem [shape: f32[1,32], index: 9, kind: input, shape index: {}]   ;;  %s5173_s10 = inlined_call_operand.hbm [shape: f32[32,64], index: 10, kind: input, shape index: {}]   ;;  %s5174_s11 = inlined_call_operand.vmem [shape: f32[1,64], index: 11, kind: input, shape index: {}]   ;;  %s5175_s12 = inlined_call_operand.hbm [shape: f32[32,32], index: 12, kind: input, shape index: {}]   ;;  %s5176_s13 = inlined_call_operand.vmem [shape: f32[1,32], index: 13, kind: input, shape index: {}]   ;;  %s5177_s14 = inlined_call_operand.hbm [shape: f32[32,64], index: 14, kind: input, shape index: {}]   ;;  %s5178_s15 = inlined_call_operand.vmem [shape: f32[1,64], index: 15, kind: input, shape index: {}]   ;;  %s5179_s16 = inlined_call_operand.vmem [shape: f32[64,32], index: 16, kind: input, shape index: {}]   ;;  %s5180_s17 = inlined_call_operand.vmem [shape: f32[1,32], index: 17, kind: input, shape index: {}]   ;;  %s5181_s18 = inlined_call_operand.hbm [shape: f32[2,8,32], index: 18, kind: output, shape index: {0}]   ;;  %s5182_s19 = inlined_call_operand.hbm [shape: f32[2,4,8,8], index: 19, kind: output, shape index: {1}]   ;;  %s5183_s20 = inlined_call_operand.hbm [shape: f32[2,4,8,8], index: 20, kind: output, shape index: {2}]  }
   0x1   :  { %5220 = sst [smem:[#allocation29_spill]] %s5163_s0 }
   0x2   :  { %5221 = sst [smem:[#allocation30_spill]] %s5164_s1 }
   0x3   :  { %5222 = sst [smem:[#allocation31_spill]] %s5165_s2 }
   0x4   :  { %5223 = sst [smem:[#allocation32_spill]] %s5166_s3 }
   0x5   :  { %5224 = sst [smem:[#allocation33_spill]] %s5167_s4 }
   0x6   :  { %5225 = sst [smem:[#allocation34_spill]] %s5168_s5 }
   0x7   :  { %5226 = sst [smem:[#allocation35_spill]] %s5172_s9 }
   0x8   :  { %5227 = sst [smem:[#allocation36_spill]] %s5173_s10 }
   0x9   :  { %5228 = sst [smem:[#allocation37_spill]] %s5174_s11 }
   0xa   :  { %5229 = sst [smem:[#allocation38_spill]] %s5176_s13 }
   0xb   :  { %5230 = sst [smem:[#allocation39_spill]] %s5178_s15 }
   0xc   :  { %5231 = sst [smem:[#allocation40_spill]] %s5179_s16 }
   0xd   :  { %5232 = sst [smem:[#allocation41_spill]] %s5180_s17 }
   0xe   :  { %5233 = sst [smem:[#allocation42_spill]] %s5181_s18 }
   0xf   :  { %5234 = sst [smem:[#allocation43_spill]] %s5182_s19 }
  0x10   :  { %5235 = sst [smem:[#allocation44_spill]] %s5183_s20 }
  0x11   :  { %26 = vsyncpa [#allocation3], 0 }
  0x12   :  { %28 = vsyncpa [#allocation3 + $0x1], 0 }
  0x13   :  { %29 = vsyncpa [#allocation6], 0 }
  0x14   :  { %31 = vsyncpa [#allocation6 + $0x1], 0 }
  0x15   :  { %32 = vsyncpa [#allocation9], 0 }
  0x16   :  { %33 = vsyncpa [#allocation12], 0 }
  0x17   :  { %34 = vsyncpa [#allocation4], 0 }
  0x18   :  { %36 = vsyncpa [#allocation4 + $0x1], 0 }
  0x19   :  { %37 = vsyncpa [#allocation15], 0 }
  0x1a   :  { %39 = vsyncpa [#allocation15 + $0x1], 0  ;;  %s4420_s1 = smov 0   ;;  %s4422_s22 = smov 0  }
  0x1b   :  { %s4424_s23 = smov 0   ;;  %s4426_s24 = smov 0  }
  0x1c LB: > { %5236 = sst [smem:[#allocation23_spill]] %s4274_s1  ;;  %s4441_s2 = sadd.s32 4294967295, %s4286_s24   ;;  %s4286_s24 = sphi %s4426_s24, %s5290_s24   ;;  %s4282_s23 = sphi %s4424_s23, %s5294_s23   ;;  %s4278_s22 = sphi %s4422_s22, %s5293_s22   ;;  %s4274_s1 = sphi %s4420_s1, %s5292_s1  }
  0x1d   : > { %5237 = sst [smem:[#allocation24_spill]] %s4286_s24  ;;  %s5188_s25 = sadd.s32 4294967294, %s4286_s24  }
  0x1e   : > { %p65_p0 = scmp.ne.s32.totalorder %s4278_s22, %s4274_s1  ;;  %p5194_p1 = scmp.eq.s32.totalorder %s4441_s2, 0 }
  0x1f   : > { %p467_p3 = scmp.eq.s32.totalorder %s5188_s25, 1  ;;  %p3448_p5 = scmp.ge.s32.totalorder %s4286_s24, 1 }
  0x20   : > { %p4452_p4 = por %p5194_p1, %p65_p0  ;;  %p526_p7 = scmp.lt.s32.totalorder %s4286_s24, 3 }
  0x21   : > { %p4457_p6 = por %p467_p3, %p65_p0  ;;  %s4288_s28 = smov [#allocation8]  }
  0x22   : > { %s5238_s3 = scalar_select %p4452_p4, 1, 0 }
  0x23   : > { %s5239_s26 = scalar_select %p4457_p6, 1, 0 }
  0x24   : > { %p4462_p8 = pnand %p3448_p5, %p526_p7  ;;  %s556_s4 = sshll.u32 %s4288_s28, 4  ;;  %s4466_s4 = int_to_ptr.vmem [resolvable:$true] %s556_s4 }
  0x25   : > { %5240 = sst [smem:[#allocation25_spill]] %s5239_s26  ;;  %s4478_s30 = sadd.s32 1, %s4286_s24  }
  0x26   : > { %s5241_s27 = scalar_select %p4462_p8, 1, 0 }
  0x27   : > { %p3851_p9 = pneg %p4462_p8  ;;  %5243 = sst [smem:[#allocation26_spill]] %s4478_s30 }
  0x28   : > { %s52_s0 = sadd.s32 1, %s4282_s23  ;;  %s49_s21 = ssub.s32 %s4286_s24, %s4478_s30 }
  0x29   : > { %p4473_p11 = pnand %p3851_p9, %p5194_p1  ;;  %s5244_s10 = sld [smem:[#allocation36_spill]] }
  0x2b   : > { %s5242_s29 = scalar_select %p4473_p11, 1, 0 }
  0x2c   : > { %p4491_p13 = pneg %p4473_p11 }
  0x2e   : > { %s5245_s17 = scalar_select %p4491_p13, 1, 0 }
  0x2f   : > { %s3974_s28 = scalar_lea.hbm %s5244_s10, 512 }
  0x30   : > { %p3975_p12 = scmp.ne.s32.totalorder %s5244_s10, %s3974_s28  ;;  %p3981_p5 = scmp.lt.u32.totalorder %s3974_s28, %s5244_s10 }
  0x32   : > { %p3977_p0 = pnand %p4491_p13, %p3975_p12 }
  0x34   : > { %p3978_p3 = pneg %p3977_p0 }
  0x36   : > { %p3983_p7 = pnand %p3981_p5, %p3978_p3 }
  0x38   : > { %3986 = shalt.err (!%p3983_p7)
}
  0x39   : > { %s3987_s18 = scalar_lea.vmem %s4466_s4, 512  ;;  %p3995_p2 = scmp.lt.s32.totalorder %s4466_s4, %s4466_s4 }
  0x3a   : > { %p3988_p9 = scmp.ne.s32.totalorder %s4466_s4, %s3987_s18  ;;  %p3996_p6 = scmp.lt.s32.totalorder %s3987_s18, %s3987_s18 }
  0x3c   : > { %p3990_p10 = pnand %p3988_p9, %p4491_p13  ;;  %p3997_p12 = por %p3996_p6, %p3995_p2 }
  0x3e   : > { %p3991_p1 = pneg %p3990_p10 }
  0x40   : > { %p3998_p0 = pnand %p3997_p12, %p3991_p1 }
  0x42   : > { %4001 = shalt.err (!%p3998_p0)
}
  0x43   : > { %s5197_s1 = smov 128   ;;  %s5199_s19 = smov 8  }
  0x44   : > { %3854 = dma.hbm_to_vmem [thread:$0]  (!%p4473_p11), %s5244_s10, 512, %s4466_s4, [#allocation9], %s5197_s1, %s5197_s1, %s5199_s19  }
  0x45   : > { %p50_p1 = scmp.eq.s32.totalorder %s49_s21, 0  ;;  %p59_p2 = scmp.ne.s32.totalorder %s4282_s23, %s4278_s22 }
  0x46   : > { %p60_p6 = scmp.eq.s32.totalorder %s4286_s24, 0  ;;  %p3884_p10 = scmp.lt.s32.totalorder %s4286_s24, 2 }
  0x47   : > { %s4520_s26 = scalar_select %p50_p1, %s4282_s23, %s52_s0  }
  0x48   : > { %p61_p3 = por %p60_p6, %p59_p2  ;;  %p5247_p5 = scmp.eq.s32.totalorder %s4441_s2, 1 }
  0x49   : > { %5246 = sst [smem:[#allocation27_spill]] %s4520_s26  ;;  %s5201_s18 = sand.u32 1, %s4282_s23  }
  0x4a   : > { %p4524_p7 = por %p5247_p5, %p59_p2  ;;  %s4530_s30 = sshll.u32 %s4286_s24, 7 }
  0x4b   : > { %s4534_s15 = sshll.u32 %s5201_s18, 3  ;;  %p4536_p9 = pnand %p3884_p10, %p61_p3 }
  0x4c   : > { %s5248_s28 = scalar_select %p4524_p7, 1, 0 }
  0x4d   : > { %s5250_s4 = scalar_select %p4536_p9, 1, 0 }
  0x4e   : > { %5249 = sst [smem:[#allocation28_spill]] %s5248_s28  ;;  %s629_s0 = sand.u32 1, %s4286_s24  }
  0x4f   : > { %s5251_s25 = sld [smem:[#allocation30_spill]]  ;;  %s633_s19 = scalar_lea.vmem [#allocation5], %s4534_s15 }
  0x50   : > { %s640_s10 = sshll.u32 %s633_s19, 4  ;;  %s4550_s18 = scalar_lea.sflag [#allocation6], %s629_s0  ;;  %s4548_s10 = int_to_ptr.vmem [resolvable:$true] %s640_s10 }
  0x51   : > { %p4556_p0 = pneg %p4536_p9 }
  0x53   : > { %s5252_s24 = scalar_select %p4556_p0, 1, 0 }
  0x55   : > { %s4545_s1 = scalar_lea.hbm %s5251_s25, %s4530_s30  ;;  %s4007_s28 = scalar_lea.hbm %s5251_s25, 256 }
  0x56   : > { %s4002_s26 = scalar_lea.hbm %s4545_s1, 128  ;;  %p4008_p6 = scmp.lt.u32.totalorder %s4545_s1, %s5251_s25 }
  0x57   : > { %p4003_p12 = scmp.ne.s32.totalorder %s4545_s1, %s4002_s26  ;;  %p4009_p10 = scmp.lt.u32.totalorder %s4007_s28, %s4002_s26 }
  0x58   : > { %p4011_p5 = scmp.lt.u32.totalorder %s4002_s26, %s4545_s1 }
  0x59   : > { %p4005_p1 = pnand %p4556_p0, %p4003_p12  ;;  %p4010_p3 = por %p4009_p10, %p4008_p6 }
  0x5b   : > { %p4006_p2 = pneg %p4005_p1  ;;  %p4012_p7 = por %p4011_p5, %p4010_p3 }
  0x5d   : > { %p4013_p4 = pnand %p4012_p7, %p4006_p2 }
  0x5f   : > { %4016 = shalt.err (!%p4013_p4)
}
  0x60   : > { %s4017_s0 = scalar_lea.vmem %s4548_s10, 128  ;;  %s4291_s21 = smov [#allocation5]  }
  0x61   : > { %p4018_p12 = scmp.ne.s32.totalorder %s4548_s10, %s4017_s0  ;;  %s4022_s20 = sshll.u32 %s4291_s21, 4  ;;  %s4023_s20 = int_to_ptr.vmem [resolvable:$false] %s4022_s20 }
  0x62   : > { %s4024_s13 = scalar_lea.vmem %s4023_s20, 256  ;;  %p4025_p11 = scmp.lt.s32.totalorder %s4548_s10, %s4023_s20 }
  0x63   : > { %p4020_p1 = pnand %p4018_p12, %p4556_p0  ;;  %p4026_p13 = scmp.lt.s32.totalorder %s4024_s13, %s4017_s0 }
  0x65   : > { %p4021_p8 = pneg %p4020_p1  ;;  %p4027_p6 = por %p4026_p13, %p4025_p11 }
  0x67   : > { %p4028_p10 = pnand %p4027_p6, %p4021_p8 }
  0x69   : > { %4031 = shalt.err (!%p4028_p10)
}
  0x6a   : > { %3867 = dma.hbm_to_vmem [thread:$0]  (!%p4536_p9), %s4545_s1, 128, %s4548_s10, %s4550_s18  }
  0x6b   : > { %s4292_s26 = smov [#allocation10]   ;;  %s4293_s19 = smov [#allocation11]  }
  0x6c   : > { %s572_s28 = sshll.u32 %s4292_s26, 4  ;;  %s588_s25 = sshll.u32 %s4293_s19, 4  ;;  %s573_s28 = int_to_ptr.vmem [resolvable:$true] %s572_s28  ;;  %s589_s25 = int_to_ptr.vmem [resolvable:$true] %s588_s25 }
  0x6d   : > { %s4032_s20 = scalar_lea.hbm %s5175_s12, 512  ;;  %p5253_p8 = scmp.ne.s32.totalorder %s5245_s17, 0 }
  0x6e   : > { %p4033_p4 = scmp.ne.s32.totalorder %s5175_s12, %s4032_s20  ;;  %p4039_p7 = scmp.lt.u32.totalorder %s4032_s20, %s5175_s12 }
  0x70   : > { %p4035_p11 = pnand %p4033_p4, %p5253_p8 }
  0x72   : > { %p4036_p13 = pneg %p4035_p11 }
  0x74   : > { %p4041_p2 = pnand %p4039_p7, %p4036_p13 }
  0x76   : > { %4044 = shalt.err (!%p4041_p2)
}
  0x77   : > { %s4045_s10 = scalar_lea.vmem %s573_s28, 512  ;;  %p4053_p1 = scmp.lt.s32.totalorder %s573_s28, %s573_s28 }
  0x78   : > { %p4046_p3 = scmp.ne.s32.totalorder %s573_s28, %s4045_s10  ;;  %p4054_p6 = scmp.lt.s32.totalorder %s4045_s10, %s4045_s10 }
  0x7a   : > { %p4048_p5 = pnand %p4046_p3, %p5253_p8  ;;  %p4055_p10 = por %p4054_p6, %p4053_p1 }
  0x7c   : > { %p4049_p12 = pneg %p4048_p5 }
  0x7e   : > { %p4056_p9 = pnand %p4055_p10, %p4049_p12 }
  0x80   : > { %4059 = shalt.err (!%p4056_p9)
}
  0x81   : > { %p5254_p4 = scmp.ne.s32.totalorder %s5242_s29, 0  ;;  %s5255_s16 = smov 8  }
  0x82   : > { %s5256_s1 = smov 128   ;;  %s4060_s21 = scalar_lea.hbm %s5177_s14, 512 }
  0x83   : > { %3857 = dma.hbm_to_vmem [thread:$0]  (!%p5254_p4), %s5175_s12, 512, %s573_s28, [#allocation9], %s5256_s1, %s5256_s1, %s5255_s16  }
  0x84   : > { %p4061_p11 = scmp.ne.s32.totalorder %s5177_s14, %s4060_s21  ;;  %p4067_p7 = scmp.lt.u32.totalorder %s4060_s21, %s5177_s14 }
  0x86   : > { %p4063_p9 = pnand %p4061_p11, %p5253_p8 }
  0x88   : > { %p4064_p13 = pneg %p4063_p9 }
  0x8a   : > { %p4069_p2 = pnand %p4067_p7, %p4064_p13 }
  0x8c   : > { %4072 = shalt.err (!%p4069_p2)
}
  0x8d   : > { %s4073_s9 = scalar_lea.vmem %s589_s25, 512  ;;  %p4081_p1 = scmp.lt.s32.totalorder %s589_s25, %s589_s25 }
  0x8e   : > { %p4074_p3 = scmp.ne.s32.totalorder %s589_s25, %s4073_s9  ;;  %p4082_p6 = scmp.lt.s32.totalorder %s4073_s9, %s4073_s9 }
  0x90   : > { %p4076_p5 = pnand %p4074_p3, %p5253_p8  ;;  %p4083_p10 = por %p4082_p6, %p4081_p1 }
  0x92   : > { %p4077_p12 = pneg %p4076_p5 }
  0x94   : > { %p4084_p0 = pnand %p4083_p10, %p4077_p12 }
  0x96   : > { %4087 = shalt.err (!%p4084_p0)
}
  0x97   : > { %3860 = dma.hbm_to_vmem [thread:$0]  (!%p5254_p4), %s5177_s14, 512, %s589_s25, [#allocation12], %s5256_s1, %s5256_s1, %s5255_s16  }
  0x98   : > { %s5257_s19 = sld [smem:[#allocation29_spill]]  ;;  %s615_s29 = scalar_lea.vmem [#allocation2], %s4534_s15 }
  0x99   : > { %s622_s20 = sshll.u32 %s615_s29, 4  ;;  %s5258_s10 = sld [smem:[#allocation31_spill]]  ;;  %s4629_s20 = int_to_ptr.vmem [resolvable:$true] %s622_s20 }
  0x9a   : > { %s5259_s28 = sand.u32 1, %s4282_s23   ;;  %p5260_p8 = scmp.ne.s32.totalorder %s5252_s24, 0 }
  0x9b   : > { %s612_s25 = scalar_lea.sflag [#allocation3], %s5259_s28 }
  0x9e   : > { %s4626_s21 = scalar_lea.hbm %s5257_s19, %s4530_s30  ;;  %s4093_s17 = scalar_lea.hbm %s5257_s19, 256 }
  0x9f   : > { %s4635_s9 = scalar_lea.hbm %s5258_s10, %s4530_s30  ;;  %s4088_s16 = scalar_lea.hbm %s4626_s21, 128 }
  0xa0   : > { %p4089_p0 = scmp.ne.s32.totalorder %s4626_s21, %s4088_s16  ;;  %p4094_p9 = scmp.lt.u32.totalorder %s4626_s21, %s5257_s19 }
  0xa1   : > { %p4095_p13 = scmp.lt.u32.totalorder %s4093_s17, %s4088_s16  ;;  %p4097_p2 = scmp.lt.u32.totalorder %s4088_s16, %s4626_s21 }
  0xa2   : > { %p4091_p4 = pnand %p4089_p0, %p5260_p8 }
  0xa3   : > { %p4096_p7 = por %p4095_p13, %p4094_p9 }
  0xa4   : > { %p4092_p11 = pneg %p4091_p4 }
  0xa5   : > { %p4098_p3 = por %p4097_p2, %p4096_p7 }
  0xa7   : > { %p4099_p5 = pnand %p4098_p3, %p4092_p11 }
  0xa9   : > { %4102 = shalt.err (!%p4099_p5)
}
  0xaa   : > { %s4103_s30 = scalar_lea.vmem %s4629_s20, 128  ;;  %s4294_s0 = smov [#allocation2]  }
  0xab   : > { %p4104_p12 = scmp.ne.s32.totalorder %s4629_s20, %s4103_s30  ;;  %s4108_s13 = sshll.u32 %s4294_s0, 4  ;;  %s4109_s13 = int_to_ptr.vmem [resolvable:$false] %s4108_s13 }
  0xac   : > { %s4110_s28 = scalar_lea.vmem %s4109_s13, 256  ;;  %p4111_p10 = scmp.lt.s32.totalorder %s4629_s20, %s4109_s13 }
  0xad   : > { %p4106_p1 = pnand %p4104_p12, %p5260_p8  ;;  %p4112_p0 = scmp.lt.s32.totalorder %s4110_s28, %s4103_s30 }
  0xaf   : > { %p4107_p6 = pneg %p4106_p1  ;;  %p4113_p4 = por %p4112_p0, %p4111_p10 }
  0xb1   : > { %p4114_p9 = pnand %p4113_p4, %p4107_p6 }
  0xb3   : > { %4117 = shalt.err (!%p4114_p9)
}
  0xb4   : > { %p5261_p11 = scmp.ne.s32.totalorder %s5250_s4, 0  ;;  %s651_s16 = scalar_lea.vmem [#allocation7], %s4534_s15 }
  0xb5   : > { %s658_s1 = sshll.u32 %s651_s16, 4  ;;  %s4118_s11 = scalar_lea.hbm %s4635_s9, 128  ;;  %s659_s1 = int_to_ptr.vmem [resolvable:$true] %s658_s1 }
  0xb6   : > { %3864 = dma.hbm_to_vmem [thread:$0]  (!%p5261_p11), %s4626_s21, 128, %s4629_s20, %s612_s25  }
  0xb7   : > { %p4119_p13 = scmp.ne.s32.totalorder %s4635_s9, %s4118_s11  ;;  %s4123_s29 = scalar_lea.hbm %s5258_s10, 256 }
  0xb8   : > { %p4124_p3 = scmp.lt.u32.totalorder %s4635_s9, %s5258_s10  ;;  %p4125_p5 = scmp.lt.u32.totalorder %s4123_s29, %s4118_s11 }
  0xb9   : > { %p4121_p7 = pnand %p4119_p13, %p5260_p8  ;;  %p4127_p1 = scmp.lt.u32.totalorder %s4118_s11, %s4635_s9 }
  0xba   : > { %p4126_p12 = por %p4125_p5, %p4124_p3 }
  0xbb   : > { %p4122_p2 = pneg %p4121_p7 }
  0xbc   : > { %p4128_p6 = por %p4127_p1, %p4126_p12 }
  0xbe   : > { %p4129_p10 = pnand %p4128_p6, %p4122_p2 }
  0xc0   : > { %4132 = shalt.err (!%p4129_p10)
}
  0xc1   : > { %s4133_s15 = scalar_lea.vmem %s659_s1, 128  ;;  %s4295_s21 = smov [#allocation7]  }
  0xc2   : > { %p4134_p0 = scmp.ne.s32.totalorder %s659_s1, %s4133_s15  ;;  %s4138_s20 = sshll.u32 %s4295_s21, 4  ;;  %s4139_s20 = int_to_ptr.vmem [resolvable:$false] %s4138_s20 }
  0xc3   : > { %s4140_s25 = scalar_lea.vmem %s4139_s20, 256  ;;  %p4141_p13 = scmp.lt.s32.totalorder %s659_s1, %s4139_s20 }
  0xc4   : > { %p4136_p4 = pnand %p4134_p0, %p5260_p8  ;;  %p4142_p7 = scmp.lt.s32.totalorder %s4140_s25, %s4133_s15 }
  0xc6   : > { %p4137_p9 = pneg %p4136_p4  ;;  %p4143_p11 = por %p4142_p7, %p4141_p13 }
  0xc8   : > { %p4144_p3 = pnand %p4143_p11, %p4137_p9 }
  0xca   : > { %4147 = shalt.err (!%p4144_p3)
}
  0xcb   : > { %p5262_p5 = scmp.ne.s32.totalorder %s5250_s4, 0  ;;  %p5263_p2 = scmp.ne.s32.totalorder %s5241_s27, 0 }
  0xcc   : > { %s4682_s24 = sand.u32 (!%p5263_p2), 1, %s4278_s22   ;;  %p5264_p8 = scmp.ne.s32.totalorder (!%p5263_p2), %s5238_s3, 0 }
  0xcd   : > { %3870 = dma.hbm_to_vmem [thread:$0]  (!%p5262_p5), %s4635_s9, 128, %s659_s1, %s4550_s18  }
  0xce   : > { %673 = sbr.rel (%p5263_p2) target bundleno = 5814 (0x16b6), region = 92  ;;  %s4685_s13 = sshll.u32 (!%p5263_p2), %s4682_s24, 3 }
  0xcf   : > { %s676_s28 = scalar_lea.sflag (!%p5263_p2), [#allocation3], %s4682_s24  ;;  %s679_s16 = scalar_lea.vmem (!%p5263_p2), [#allocation2], %s4685_s13 }
  0xd5   : > { %4249 = dma.done.wait (%p5264_p8), %s676_s28, 128  }
  0xd6   : > { %4251 = vsyncadd (%p5264_p8), %s676_s28, 4294967168  ;;  %s684_s27 = sand.u32 1, %s4441_s2   ;;  %s688_s4 = scalar_lea.vmem [#allocation5], %s4685_s13 }
  0xd7   : > { %s685_s18 = scalar_lea.sflag [#allocation6], %s684_s27 }
  0xd8   : > { %4253 = dma.done.wait (%p5264_p8), %s685_s18, 256  }
  0xd9   : > { %4255 = vsyncadd (%p5264_p8), %s685_s18, 4294967040  ;;  %s697_s9 = scalar_lea.vmem [#allocation7], %s4685_s13  ;;  %p5265_p11 = scmp.eq.s32.totalorder %s4441_s2, 0 }
  0xdb   : > { %4257 = dma.done.wait (%p5265_p11), [#allocation9], 1024   ;;  %p5266_p12 = pmov %p5265_p11 }
  0xdc   : > { %p5267_p1 = pmov %p5265_p11 }
  0xdd   : > { %4259 = vsyncadd (%p5266_p12), [#allocation9], 4294966272 }
  0xde   : > { %4261 = dma.done.wait (%p5267_p1), [#allocation12], 512   ;;  %p5268_p6 = pmov %p5267_p1 }
  0xdf   : > { %v4296_v0 = vmov 0.0|0.0   ;;  %vm4297_vm0 = vmmov 0   ;;  %v4298_v1 = vmov 0.0   ;;  %s5269_s11 = sld [smem:[#allocation33_spill]]  ;;  %v792_v8 = vld [vmem:[%s679_s16] sm:$0xff]  ;;  %vm807_vm1 = vcmask 261120  }
  0xe0   : > { %4263 = vsyncadd (%p5268_p6), [#allocation12], 4294966784  ;;  %3791 = vmatprep.subr.bf16.mxu0 %v4296_v0  ;;  %3616 = vmatprep.mubr.msk.f32.mxu0 %vm4297_vm0, %v4298_v1  ;;  %s5270_s5 = sld [smem:[#allocation34_spill]]  ;;  %s4299_s25 = smov 96   ;;  %vm886_vm2 = vcmask 64512   ;;  %v794_v17 = vld [vmem:[%s697_s9] sm:$0xff] }
  0xe1   : > { %3624 = vmatprep.subr.mxu1 %v4298_v1  ;;  %3626 = vmatprep.mubr.msk.f32.mxu1 %vm4297_vm0, %v4298_v1  ;;  %s4300_s28 = smov 120   ;;  %s4301_s16 = smov 88   ;;  %v4760_v18 = vmul.f32 -1e+09, %v794_v17  ;;  %v1218_v37 = vld [vmem:[%s5169_s6 + $0x8] sm:$0xff]  ;;  %v1050_v46 = vld [vmem:[%s5169_s6] sm:$0xff] }
  0xe2   : > { %s4302_s18 = smov 56   ;;  %s4303_s9 = smov 64   ;;  %vm3104_vm3 = vcmask 523264  }
  0xe3   : > { %s4304_s3 = smov 80   ;;  %s4305_s1 = smov 112  }
  0xe4   : > { %s3467_s29 = sshll.u32 %s4682_s24, 5  ;;  %s4306_s21 = smov 72  }
  0xe5   : > { %v796_v2 = vld [vmem:[%s5269_s11] sm:$0xff]  ;;  %v797_v3 = vld [vmem:[%s5269_s11 + $0x8] sm:$0xff]  ;;  %v798_v4 = vld [vmem:[%s5269_s11 + $0x10] sm:$0xff]  ;;  %s4782_s30 = scalar_lea.vmem [#allocation14], %s3467_s29  ;;  %s4307_s20 = smov 104  }
  0xe6   : > { %v3792_v5 = vpack.c.bf16 %v797_v3, %v796_v2  ;;  %v799_v6 = vld [vmem:[%s5269_s11 + $0x18] sm:$0xff]  ;;  %v3469_v9 = vld [vmem:[%s5270_s5] ss:$0 sm:$0xff]  ;;  %s4309_s26 = smov 40   ;;  %s5271_s15 = sld [smem:[#allocation37_spill]] }
  0xe7   : > { %v3795_v7 = vpack.c.bf16 %v799_v6, %v798_v4  ;;  %s5272_s17 = sld [smem:[#allocation35_spill]]  ;;  %p789_p10 = scmp.lt.s32.totalorder %s4441_s2, 1 }
  0xe8   : > { %3793 = vmatpush3.bf16.msra.mxu0 %v3792_v5  ;;  %s5273_s0 = sld [smem:[#allocation32_spill]] }
  0xe9   : > { %3794 = vmatprep.subr.bf16.mxu0 %v4296_v0 }
  0xec   : > { %3796 = vmatpush3.bf16.msra.mxu0 %v3795_v7 }
  0xed   : > { %3619 = vmatprep.subr.mxu0 %v4298_v1 }
  0xef   : > { %3617 = vmatmul.mubr.msk.f32.vlgmr.msra.gmra.mrb[0].mxu0 %vm807_vm1, %v792_v8 }
  0xf0   : > { %3621 = vmatprep.mubr.msk.f32.mxu0 %vm4297_vm0, %v4298_v1 }
 0x1c2   : > { %v877_v10 = vpop.f32.mrb[0].mxu0 }
 0x1c3   : > { %v4736_v11 = vadd.f32 %v3469_v9, %v877_v10  ;;  %v3618_v12 = vpop.f32.mrb[1].mxu0 }
 0x1c4   : > { %v1532_v12 = vld [vmem:[%s5169_s6 + $0x10] sm:$0xff] }
 0x1c5   : > { %884 = vrot.lane.b32.xlu0 %v4736_v11, %s4299_s25  ;;  %v4741_v13 = vmul.f32 0.35355338, %v4736_v11 }
 0x1c7   : > { %1051 = vrot.lane.b32.xlu1 %v4741_v13, %s4300_s28 }
 0x1c9   : > { %1053 = vrot.lane.b32.xlu0 %v4736_v11, %s4301_s16 }
 0x237   : > { %v885_v14 = vpop.permute.xlu0 %884 }
 0x238   : > { %3620 = vmatpush3.xpose.msk.msra.mxu0 %vm886_vm2, %v885_v14 }
 0x239   : > { %3629 = vmatprep.subr.mxu0 %v4298_v1  ;;  %v1052_v16 = vpop.permute.xlu1 %1051 }
 0x23b   : > { %v1054_v15 = vpop.permute.xlu0 %1053  ;;  %3622 = vmatmul.mubr.msk.f32.vlgmr.msra.gmra.mrb[2].mxu0 %vm886_vm2, %v4741_v13 }
 0x23c   : > { %3630 = vmatpush3.xpose.msk.msra.mxu0 %vm886_vm2, %v1054_v15  ;;  %3631 = vmatprep.mubr.msk.f32.mxu0 %vm4297_vm0, %v4298_v1 }
 0x23d   : > { %3639 = vmatprep.subr.mxu0 %v4298_v1 }
 0x23f   : > { %3632 = vmatmul.mubr.msk.f32.vlgmr.msra.gmra.mrb[4].mxu0 %vm886_vm2, %v1052_v16 }
 0x240   : > { %3641 = vmatprep.mubr.msk.f32.mxu0 %vm4297_vm0, %v4298_v1  ;;  %3640 = vmatpush3.msra.mxu0 %v1218_v37 }
 0x241   : > { %3649 = vmatprep.subr.mxu0 %v4298_v1 }
 0x30e   : > { %v958_v19 = vpop.f32.mrb[2].mxu0 }
 0x30f   : > { %v959_v20 = vadd.f32 %v958_v19, %v4760_v18  ;;  %v3623_v21 = vpop.f32.mrb[3].mxu0 }
 0x311   : > { %v962_v22 = vsel %vm886_vm2, %v959_v20, -inf }
 0x312   : > { %963 = vmax.xlane.f32.xlu1 %v962_v22  ;;  %v1125_v23 = vpop.f32.mrb[4].mxu0 }
 0x313   : > { %v1126_v24 = vadd.f32 %v1125_v23, %v4760_v18  ;;  %v3633_v25 = vpop.f32.mrb[5].mxu0 }
 0x315   : > { %v1129_v26 = vsel %vm886_vm2, %v1126_v24, -inf }
 0x316   : > { %1130 = vmax.xlane.f32.xlu0 %v1129_v26 }
 0x39f   : > { %v964_v27 = vpop.xlane.xlu1 %963 }
 0x3a0   : > { %v965_v28 = vsub.f32 %v959_v20, %v964_v27 }
 0x3a2   : > { %v966_v29 = vmul.f32 1.442695, %v965_v28 }
 0x3a3   : > { %v1131_v30 = vpop.xlane.xlu0 %1130 }
 0x3a4   : > { %3942 = vpow2.f32 %v966_v29  ;;  %v1132_v31 = vsub.f32 %v1126_v24, %v1131_v30 }
 0x3a6   : > { %v1133_v32 = vmul.f32 1.442695, %v1132_v31  ;;  %v1857_v31 = vld [vmem:[%s5171_s8] sm:$0xff] }
 0x3a8   : > { %3944 = vpow2.f32 %v1133_v32  ;;  %v1858_v32 = vld [vmem:[%s5171_s8 + $0x8] sm:$0xff] }
 0x3ae   : > { %v3943_v33 = vpop.eup %3942 }
 0x3af   : > { %v968_v34 = vsel %vm886_vm2, %v3943_v33, 0.0 }
 0x3b0   : > { %969 = vadd.xlane.f32.xlu0 %v968_v34  ;;  %v1941_v34 = vld [vmem:[#allocation8] sm:$0xff] }
 0x3b2   : > { %v3945_v35 = vpop.eup %3944 }
 0x3b3   : > { %v1135_v36 = vsel %vm886_vm2, %v3945_v35, 0.0 }
 0x3b4   : > { %1136 = vadd.xlane.f32.xlu1 %v1135_v36 }
 0x3c5   : > { %1142 = vrot.lane.b32.xlu1 %v4736_v11, %s4302_s18  ;;  %s4308_s18 = smov 48  }
 0x3c6   : > { %974 = vrot.lane.b32.xlu0 %v4736_v11, %s4303_s9  ;;  %s4310_s9 = smov [#allocation14]  }
 0x3c9   : > { %1367 = vrot.lane.b32.xlu1 %v4736_v11, %s4304_s3 }
 0x3ca   : > { %1365 = vrot.lane.b32.xlu0 %v4741_v13, %s4305_s1 }
 0x43d   : > { %v970_v38 = vpop.xlane.xlu0 %969 }
 0x43e   : > { %3946 = vrcp.f32 %v970_v38 }
 0x441   : > { %v1137_v39 = vpop.xlane.xlu1 %1136  ;;  %v975_v40 = vpop.permute.xlu0 %974 }
 0x442   : > { %3948 = vrcp.f32 %v1137_v39  ;;  %3625 = vmatpush3.msra.mxu1 %v975_v40  ;;  %v1943_v39 = vld [vmem:[#allocation8 + $0x10] sm:$0xff]  ;;  %v1944_v40 = vld [vmem:[#allocation8 + $0x18] sm:$0xff] }
 0x443   : > { %3634 = vmatprep.subr.mxu1 %v4298_v1 }
 0x445   : > { %v1143_v43 = vpop.permute.xlu1 %1142  ;;  %v1366_v52 = vpop.permute.xlu0 %1365 }
 0x448   : > { %v3947_v41 = vpop.eup %3946 }
 0x449   : > { %v972_v42 = vmul.f32 %v3947_v41, %v3943_v33  ;;  %v1368_v50 = vpop.permute.xlu1 %1367  ;;  %v3798_v33 = vpack.c.bf16 %v1858_v32, %v1857_v31  ;;  %v3807_v41 = vpack.c.bf16 %v1944_v40, %v1943_v39 }
 0x44b   : > { %973 = vst.msk [vmem:[%s4782_s30] sm:$0xff] %vm886_vm2, %v972_v42  ;;  %3627 = vmatmul.mubr.msk.f32.vlgmr.msra.gmra.mrb[0].mxu1 %vm886_vm2, %v972_v42  ;;  %v1859_v42 = vld [vmem:[%s5171_s8 + $0x10] sm:$0xff] }
 0x44c   : > { %v3949_v44 = vpop.eup %3948  ;;  %3635 = vmatpush3.msra.mxu1 %v1143_v43  ;;  %3636 = vmatprep.mubr.msk.f32.mxu1 %vm4297_vm0, %v4298_v1  ;;  %v1860_v43 = vld [vmem:[%s5171_s8 + $0x18] sm:$0xff] }
 0x44d   : > { %v1139_v45 = vmul.f32 %v3949_v44, %v3945_v35  ;;  %3644 = vmatprep.subr.mxu1 %v4298_v1  ;;  %v1942_v35 = vld [vmem:[#allocation8 + $0x8] sm:$0xff]  ;;  %v3801_v44 = vpack.c.bf16 %v1860_v43, %v1859_v42 }
 0x44e   : > { %v3804_v36 = vpack.c.bf16 %v1942_v35, %v1941_v34 }
 0x44f   : > { %3476 = vst.msk [vmem:[%s4782_s30 + $0x8] sm:$0xff] %vm886_vm2, %v1139_v45  ;;  %3637 = vmatmul.mubr.msk.f32.vlgmr.msra.gmra.mrb[2].mxu1 %vm886_vm2, %v1139_v45  ;;  %v793_v45 = vld [vmem:[%s688_s4] sm:$0xff]  ;;  %s5278_s4 = sld [smem:[#allocation39_spill]] }
 0x450   : > { %3646 = vmatprep.mubr.msk.f32.mxu1 %vm4297_vm0, %v4298_v1  ;;  %3645 = vmatpush3.msra.mxu1 %v1050_v46 }
 0x451   : > { %3654 = vmatprep.subr.mxu1 %v4298_v1 }
 0x51e   : > { %v1046_v47 = vpop.f32.mrb[0].mxu1 }
 0x51f   : > { %v3628_v48 = vpop.f32.mrb[1].mxu1  ;;  %3647 = vmatmul.mubr.msk.f32.vlgmr.msra.gmra.mrb[4].mxu1 %vm886_vm2, %v1046_v47  ;;  %v3490_v47 = vld [vmem:[%s5170_s7] ss:$0 sm:$0xff] }
 0x520   : > { %3656 = vmatprep.mubr.msk.f32.mxu1 %vm4297_vm0, %v4298_v1 }
 0x522   : > { %v1214_v49 = vpop.f32.mrb[2].mxu1 }
 0x523   : > { %v3638_v51 = vpop.f32.mrb[3].mxu1  ;;  %3642 = vmatmul.mubr.msk.f32.vlgmr.msra.gmra.mrb[6].mxu0 %vm886_vm2, %v1214_v49 }
 0x524   : > { %3650 = vmatpush3.xpose.msk.msra.mxu0 %vm886_vm2, %v1368_v50  ;;  %3651 = vmatprep.mubr.msk.f32.mxu0 %vm4297_vm0, %v4298_v1  ;;  %v3493_v51 = vld [vmem:[%s5271_s15] ss:$0 sm:$0xff] }
 0x525   : > { %3659 = vmatprep.subr.mxu0 %v4298_v1 }
 0x527   : > { %3652 = vmatmul.mubr.msk.f32.vlgmr.msra.gmra.mrb[8].mxu0 %vm886_vm2, %v1366_v52 }
 0x528   : > { %3661 = vmatprep.mubr.msk.f32.mxu0 %vm4297_vm0, %v4298_v1  ;;  %3660 = vmatpush3.msra.mxu0 %v1532_v12 }
 0x529   : > { %3669 = vmatprep.subr.mxu0 %v4298_v1 }
 0x5f2   : > { %v1361_v53 = vpop.f32.mrb[4].mxu1 }
 0x5f3   : > { %v3648_v54 = vpop.f32.mrb[5].mxu1 }
 0x5f6   : > { %v1288_v55 = vpop.f32.mrb[6].mxu0 }
 0x5f7   : > { %v4810_v56 = vadd.f32 %v1361_v53, %v1288_v55  ;;  %v3643_v57 = vpop.f32.mrb[7].mxu0  ;;  %v3491_v55 = vld [vmem:[%s5272_s17] ss:$0 sm:$0xff]  ;;  %s5277_s17 = sld [smem:[#allocation28_spill]] }
 0x5fa   : > { %v1439_v58 = vpop.f32.mrb[8].mxu0 }
 0x5fb   : > { %v1440_v59 = vadd.f32 %v1439_v58, %v4760_v18  ;;  %v3653_v60 = vpop.f32.mrb[9].mxu0 }
 0x5fd   : > { %v1443_v61 = vsel %vm886_vm2, %v1440_v59, -inf  ;;  %p5280_p4 = scmp.ne.s32.totalorder %s5277_s17, 0 }
 0x5fe   : > { %1444 = vmax.xlane.f32.xlu1 %v1443_v61 }
 0x60f   : > { %1609 = vrot.lane.b32.xlu1 %v4736_v11, %s4306_s21 }
 0x613   : > { %1607 = vrot.lane.b32.xlu1 %v4741_v13, %s4307_s20 }
 0x68b   : > { %v1445_v62 = vpop.xlane.xlu1 %1444 }
 0x68c   : > { %v1446_v63 = vsub.f32 %v1440_v59, %v1445_v62  ;;  %v2028_v62 = vlaneseq }
 0x68e   : > { %v1447_v2 = vmul.f32 1.442695, %v1446_v63  ;;  %v2029_v63 = vshrl.u32 %v2028_v62, 7 }
 0x68f   : > { %v1610_v8 = vpop.permute.xlu1 %1609 }
 0x690   : > { %3950 = vpow2.f32 %v1447_v2 }
 0x693   : > { %v1608_v10 = vpop.permute.xlu1 %1607 }
 0x69a   : > { %v3951_v3 = vpop.eup %3950 }
 0x69b   : > { %v1449_v4 = vsel %vm886_vm2, %v3951_v3, 0.0 }
 0x69c   : > { %1450 = vadd.xlane.f32.xlu0 %v1449_v4  ;;  %v2030_v4 = vsub.s32 0, %v2029_v63 }
 0x6b2   : > { %1456 = vrot.lane.b32.xlu0 %v4736_v11, %s4308_s18 }
 0x729   : > { %v1451_v5 = vpop.xlane.xlu0 %1450 }
 0x72a   : > { %3952 = vrcp.f32 %v1451_v5 }
 0x72d   : > { %v1457_v6 = vpop.permute.xlu0 %1456 }
 0x72e   : > { %3655 = vmatpush3.msra.mxu1 %v1457_v6 }
 0x72f   : > { %3664 = vmatprep.subr.mxu1 %v4298_v1 }
 0x734   : > { %v3953_v7 = vpop.eup %3952 }
 0x735   : > { %v1453_v9 = vmul.f32 %v3953_v7, %v3951_v3 }
 0x737   : > { %3482 = vst.msk [vmem:[%s4782_s30 + $0x10] sm:$0xff] %vm886_vm2, %v1453_v9  ;;  %3657 = vmatmul.mubr.msk.f32.vlgmr.msra.gmra.mrb[6].mxu1 %vm886_vm2, %v1453_v9 }
 0x738   : > { %3665 = vmatpush3.xpose.msk.msra.mxu1 %vm886_vm2, %v1610_v8  ;;  %3666 = vmatprep.mubr.msk.f32.mxu1 %vm4297_vm0, %v4298_v1 }
 0x739   : > { %3674 = vmatprep.subr.mxu1 %v4298_v1 }
 0x73b   : > { %3667 = vmatmul.mubr.msk.f32.vlgmr.msra.gmra.mrb[8].mxu1 %vm886_vm2, %v1608_v10 }
 0x73c   : > { %3676 = vmatprep.mubr.msk.f32.mxu1 %vm4297_vm0, %v4298_v1 }
 0x80a   : > { %v1528_v13 = vpop.f32.mrb[6].mxu1 }
 0x80b   : > { %v3658_v14 = vpop.f32.mrb[7].mxu1  ;;  %3662 = vmatmul.mubr.msk.f32.vlgmr.msra.gmra.mrb[10].mxu0 %vm886_vm2, %v1528_v13 }
 0x80c   : > { %3671 = vmatprep.mubr.msk.f32.mxu0 %vm4297_vm0, %v4298_v1 }
 0x80e   : > { %v1681_v15 = vpop.f32.mrb[8].mxu1 }
 0x80f   : > { %v1682_v16 = vadd.f32 %v1681_v15, %v4760_v18  ;;  %v3668_v17 = vpop.f32.mrb[9].mxu1  ;;  %v1774_v18 = vld [vmem:[%s5169_s6 + $0x18] sm:$0xff] }
 0x810   : > { %3675 = vmatpush3.msra.mxu1 %v1774_v18 }
 0x811   : > { %v1685_v19 = vsel %vm886_vm2, %v1682_v16, -inf  ;;  %3803 = vmatprep.subr.bf16.mxu1 %v4296_v0 }
 0x812   : > { %1686 = vmax.xlane.f32.xlu0 %v1685_v19 }
 0x828   : > { %1698 = vrot.lane.b32.xlu0 %v4736_v11, %s4309_s26  ;;  %s790_s26 = scalar_select %p789_p10, %s4441_s2, 1 }
 0x82a   : > { %s791_s15 = scalar_lea.vmem %s5273_s0, %s790_s26  ;;  %s3529_s0 = sshll.u32 %s4441_s2, 9 }
 0x82b   : > { %v795_v2 = vld [vmem:[%s791_s15] sm:$0x1]  ;;  %s4152_s26 = sshll.u32 %s4310_s9, 4  ;;  %s4153_s26 = int_to_ptr.vmem [resolvable:$false] %s4152_s26 }
 0x82c   : > { %v2026_v3 = vmul.f32 -1e+09, %v795_v2 }
 0x82e   : > { %v4914_v5 = vrot.slane %v2026_v3, %v2030_v4 }
 0x89f   : > { %v1687_v20 = vpop.xlane.xlu0 %1686 }
 0x8a0   : > { %v1688_v21 = vsub.f32 %v1682_v16, %v1687_v20 }
 0x8a2   : > { %v1689_v22 = vmul.f32 1.442695, %v1688_v21 }
 0x8a3   : > { %v1699_v23 = vpop.permute.xlu0 %1698 }
 0x8a4   : > { %3954 = vpow2.f32 %v1689_v22  ;;  %3670 = vmatpush3.msra.mxu0 %v1699_v23 }
 0x8a5   : > { %3797 = vmatprep.subr.bf16.mxu0 %v4296_v0 }
 0x8ae   : > { %v3955_v24 = vpop.eup %3954 }
 0x8af   : > { %v1691_v25 = vsel %vm886_vm2, %v3955_v24, 0.0 }
 0x8b0   : > { %1692 = vadd.xlane.f32.xlu1 %v1691_v25 }
 0x8de   : > { %v1602_v11 = vpop.f32.mrb[10].mxu0 }
 0x8df   : > { %v1606_v26 = vadd.f32 %v1602_v11, %v4810_v56  ;;  %v3663_v27 = vpop.f32.mrb[11].mxu0 }
 0x93d   : > { %v1693_v28 = vpop.xlane.xlu1 %1692 }
 0x93e   : > { %3956 = vrcp.f32 %v1693_v28  ;;  %v2365_v28 = vld [vmem:[#allocation10 + $0x8] sm:$0xff] }
 0x948   : > { %v3957_v29 = vpop.eup %3956 }
 0x949   : > { %v1695_v30 = vmul.f32 %v3957_v29, %v3955_v24 }
 0x94b   : > { %3487 = vst.msk [vmem:[%s4782_s30 + $0x18] sm:$0xff] %vm886_vm2, %v1695_v30  ;;  %3672 = vmatmul.mubr.msk.f32.vlgmr.msra.gmra.mrb[12].mxu0 %vm886_vm2, %v1695_v30 }
 0x94c   : > { %3687 = vmatprep.mubr.msk.f32.mxu0 %vm4297_vm0, %v4298_v1  ;;  %3799 = vmatpush3.bf16.msra.mxu0 %v3798_v33  ;;  %v2197_v33 = vld [vmem:[#allocation10] sm:$0xff] }
 0x94d   : > { %3800 = vmatprep.subr.bf16.mxu0 %v4296_v0 }
 0x950   : > { %3802 = vmatpush3.bf16.msra.mxu0 %v3801_v44 }
 0x951   : > { %3701 = vmatprep.subr.mxu0 %v4298_v1 }
 0xa1e   : > { %v1770_v37 = vpop.f32.mrb[12].mxu0 }
 0xa1f   : > { %v3673_v38 = vpop.f32.mrb[13].mxu0  ;;  %3677 = vmatmul.mubr.msk.f32.vlgmr.msra.gmra.mrb[10].mxu1 %vm886_vm2, %v1770_v37 }
 0xa20   : > { %3805 = vmatpush3.bf16.msra.mxu1 %v3804_v36  ;;  %3698 = vmatprep.mubr.msk.f32.mxu1 %vm4297_vm0, %v4298_v1 }
 0xa21   : > { %3806 = vmatprep.subr.bf16.mxu1 %v4296_v0 }
 0xa24   : > { %3808 = vmatpush3.bf16.msra.mxu1 %v3807_v41 }
 0xa25   : > { %3706 = vmatprep.subr.mxu1 %v4298_v1 }
 0xa27   : > { %3699 = vmatmul.mubr.msk.f32.vlgmr.msra.gmra.mrb[12].mxu1 %vm807_vm1, %v793_v45 }
 0xa28   : > { %3708 = vmatprep.mubr.msk.f32.mxu1 %vm4297_vm0, %v4298_v1 }
 0xaf2   : > { %v1844_v46 = vpop.f32.mrb[10].mxu1 }
 0xaf3   : > { %v1848_v48 = vadd.f32 %v1844_v46, %v1606_v26  ;;  %v3678_v49 = vpop.f32.mrb[11].mxu1 }
 0xaf5   : > { %v1856_v50 = vadd.f32 %v3490_v47, %v1848_v48 }
 0xaf7   : > { %3688 = vmatmul.mubr.msk.f32.vlgmr.msra.gmra.mrb[14].mxu0 %vm807_vm1, %v1856_v50 }
 0xaf8   : > { %3703 = vmatprep.mubr.msk.f32.mxu0 %vm4297_vm0, %v4298_v1 }
 0xafa   : > { %v2021_v52 = vpop.f32.mrb[12].mxu1 }
 0xafb   : > { %v4886_v53 = vadd.f32 %v3493_v51, %v2021_v52  ;;  %v3700_v54 = vpop.f32.mrb[13].mxu1 }
 0xafd   : > { %2200 = vrot.lane.b32.xlu1 %v4886_v53, %s4300_s28  ;;  %3702 = vmatpush3.xpose.msk.msra.mxu0 %vm886_vm2, %v4886_v53 }
 0xafe   : > { %3711 = vmatprep.subr.mxu0 %v4298_v1 }
 0xb6f   : > { %v2201_v60 = vpop.permute.xlu1 %2200 }
 0xbca   : > { %v1937_v56 = vpop.f32.mrb[14].mxu0 }
 0xbcb   : > { %v1938_v57 = vadd.f32 %v3491_v55, %v1937_v56  ;;  %v3689_v58 = vpop.f32.mrb[15].mxu0 }
 0xbcd   : > { %v4896_v59 = vmul.f32 0.35355338, %v1938_v57 }
 0xbcf   : > { %2198 = vrot.lane.b32.xlu0 %v4896_v59, %s4300_s28  ;;  %3704 = vmatmul.mubr.msk.f32.vlgmr.msra.gmra.mrb[16].mxu0 %vm886_vm2, %v4896_v59  ;;  %s4154_s28 = scalar_lea.vmem %s4153_s26, 1024 }
 0xbd0   : > { %3712 = vmatpush3.xpose.msk.msra.mxu0 %vm886_vm2, %v2201_v60  ;;  %3713 = vmatprep.mubr.msk.f32.mxu0 %vm4297_vm0, %v4298_v1 }
 0xbd1   : > { %3721 = vmatprep.subr.mxu0 %v4298_v1 }
 0xc41   : > { %v2199_v61 = vpop.permute.xlu0 %2198 }
 0xc42   : > { %3714 = vmatmul.mubr.msk.f32.vlgmr.msra.gmra.mrb[18].mxu0 %vm886_vm2, %v2199_v61  ;;  %v2679_v61 = vld [vmem:[#allocation10 + $0x10] sm:$0xff] }
 0xc43   : > { %3723 = vmatprep.mubr.msk.f32.mxu0 %vm4297_vm0, %v4298_v1  ;;  %3722 = vmatpush3.msra.mxu0 %v2365_v28 }
 0xc44   : > { %3731 = vmatprep.subr.mxu0 %v4298_v1 }
 0xca2   : > { %v2105_v6 = vpop.f32.mrb[16].mxu0 }
 0xca3   : > { %v2106_v7 = vadd.f32 %v2105_v6, %v4914_v5  ;;  %v3705_v8 = vpop.f32.mrb[17].mxu0 }
 0xca5   : > { %v2109_v9 = vsel %vm886_vm2, %v2106_v7, -inf }
 0xca6   : > { %2110 = vmax.xlane.f32.xlu1 %v2109_v9 }
 0xd15   : > { %v2272_v10 = vpop.f32.mrb[18].mxu0 }
 0xd16   : > { %v2273_v12 = vadd.f32 %v2272_v10, %v4914_v5  ;;  %v3715_v13 = vpop.f32.mrb[19].mxu0 }
 0xd18   : > { %v2276_v14 = vsel %vm886_vm2, %v2273_v12, -inf }
 0xd19   : > { %2277 = vmax.xlane.f32.xlu0 %v2276_v14 }
 0xd33   : > { %v2111_v15 = vpop.xlane.xlu1 %2110 }
 0xd34   : > { %v2112_v16 = vsub.f32 %v2106_v7, %v2111_v15 }
 0xd36   : > { %v2113_v17 = vmul.f32 1.442695, %v2112_v16 }
 0xd38   : > { %3958 = vpow2.f32 %v2113_v17 }
 0xd42   : > { %v3959_v19 = vpop.eup %3958 }
 0xd43   : > { %v2115_v20 = vsel %vm886_vm2, %v3959_v19, 0.0 }
 0xd44   : > { %2116 = vadd.xlane.f32.xlu0 %v2115_v20  ;;  %v3004_v20 = vld [vmem:[#allocation11] sm:$0xff] }
 0xd5a   : > { %2121 = vrot.lane.b32.xlu0 %v4886_v53, %s4299_s25  ;;  %s4933_s25 = scalar_lea.vmem [#allocation16], %s3467_s29 }
 0xd5e   : > { %2512 = vrot.lane.b32.xlu0 %v4896_v59, %s4305_s1 }
 0xda6   : > { %v2278_v21 = vpop.xlane.xlu0 %2277 }
 0xda7   : > { %v2279_v22 = vsub.f32 %v2273_v12, %v2278_v21  ;;  %v3005_v21 = vld [vmem:[#allocation11 + $0x8] sm:$0xff] }
 0xda9   : > { %v2280_v23 = vmul.f32 1.442695, %v2279_v22  ;;  %v3810_v22 = vpack.c.bf16 %v3005_v21, %v3004_v20 }
 0xdab   : > { %3960 = vpow2.f32 %v2280_v23 }
 0xdb5   : > { %v3961_v24 = vpop.eup %3960 }
 0xdb6   : > { %v2282_v25 = vsel %vm886_vm2, %v3961_v24, 0.0 }
 0xdb7   : > { %2283 = vadd.xlane.f32.xlu1 %v2282_v25  ;;  %v3006_v25 = vld [vmem:[#allocation11 + $0x10] sm:$0xff] }
 0xdc8   : > { %2289 = vrot.lane.b32.xlu1 %v4886_v53, %s4301_s16 }
 0xdcc   : > { %2514 = vrot.lane.b32.xlu1 %v4886_v53, %s4305_s1  ;;  %s5274_s1 = sld [smem:[#allocation40_spill]] }
 0xdd1   : > { %v2117_v18 = vpop.xlane.xlu0 %2116 }
 0xdd2   : > { %3962 = vrcp.f32 %v2117_v18  ;;  %v3007_v18 = vld [vmem:[#allocation11 + $0x18] sm:$0xff]  ;;  %s5275_s29 = smov %s5274_s1 }
 0xdd3   : > { %v3091_v28 = vld [vmem:[%s5275_s29 + $0x10] sm:$0xff] }
 0xdd5   : > { %v2122_v11 = vpop.permute.xlu0 %2121 }
 0xdd6   : > { %3707 = vmatpush3.msra.mxu1 %v2122_v11  ;;  %v3813_v11 = vpack.c.bf16 %v3007_v18, %v3006_v25 }
 0xdd7   : > { %3716 = vmatprep.subr.mxu1 %v4298_v1 }
 0xdd9   : > { %v2513_v39 = vpop.permute.xlu0 %2512 }
 0xddc   : > { %v3963_v26 = vpop.eup %3962 }
 0xddd   : > { %v2119_v27 = vmul.f32 %v3963_v26, %v3959_v19  ;;  %v3089_v26 = vld [vmem:[%s5274_s1] sm:$0xff]  ;;  %s5276_s1 = sld [smem:[#allocation38_spill]] }
 0xddf   : > { %2120 = vst.msk [vmem:[%s4933_s25] sm:$0xff] %vm886_vm2, %v2119_v27  ;;  %3709 = vmatmul.mubr.msk.f32.vlgmr.msra.gmra.mrb[14].mxu1 %vm886_vm2, %v2119_v27  ;;  %v3090_v27 = vld [vmem:[%s5275_s29 + $0x8] sm:$0xff] }
 0xde0   : > { %3718 = vmatprep.mubr.msk.f32.mxu1 %vm4297_vm0, %v4298_v1 }
 0xe44   : > { %v2284_v29 = vpop.xlane.xlu1 %2283 }
 0xe45   : > { %3964 = vrcp.f32 %v2284_v29  ;;  %v3816_v29 = vpack.c.bf16 %v3090_v27, %v3089_v26 }
 0xe48   : > { %v2290_v30 = vpop.permute.xlu1 %2289 }
 0xe49   : > { %3717 = vmatpush3.msra.mxu1 %v2290_v30 }
 0xe4a   : > { %3726 = vmatprep.subr.mxu1 %v4298_v1 }
 0xe4c   : > { %v2515_v37 = vpop.permute.xlu1 %2514 }
 0xe4f   : > { %v3965_v31 = vpop.eup %3964 }
 0xe50   : > { %v2286_v32 = vmul.f32 %v3965_v31, %v3961_v24  ;;  %v3093_v31 = vld [vmem:[%s5275_s29 + $0x20] sm:$0xff] }
 0xe52   : > { %3500 = vst.msk [vmem:[%s4933_s25 + $0x8] sm:$0xff] %vm886_vm2, %v2286_v32  ;;  %3719 = vmatmul.mubr.msk.f32.vlgmr.msra.gmra.mrb[16].mxu1 %vm886_vm2, %v2286_v32  ;;  %v3094_v32 = vld [vmem:[%s5275_s29 + $0x28] sm:$0xff] }
 0xe53   : > { %3727 = vmatpush3.msra.mxu1 %v2197_v33  ;;  %3728 = vmatprep.mubr.msk.f32.mxu1 %vm4297_vm0, %v4298_v1  ;;  %v3822_v33 = vpack.c.bf16 %v3094_v32, %v3093_v31 }
 0xe54   : > { %3736 = vmatprep.subr.mxu1 %v4298_v1 }
 0xeb2   : > { %v2193_v34 = vpop.f32.mrb[14].mxu1 }
 0xeb3   : > { %v3710_v35 = vpop.f32.mrb[15].mxu1  ;;  %3729 = vmatmul.mubr.msk.f32.vlgmr.msra.gmra.mrb[18].mxu1 %vm886_vm2, %v2193_v34 }
 0xeb4   : > { %3738 = vmatprep.mubr.msk.f32.mxu1 %vm4297_vm0, %v4298_v1  ;;  %v3514_v35 = vld [vmem:[%s5276_s1] ss:$0 sm:$0xff] }
 0xf25   : > { %v2361_v36 = vpop.f32.mrb[16].mxu1 }
 0xf26   : > { %v3720_v38 = vpop.f32.mrb[17].mxu1  ;;  %3724 = vmatmul.mubr.msk.f32.vlgmr.msra.gmra.mrb[20].mxu0 %vm886_vm2, %v2361_v36 }
 0xf27   : > { %3732 = vmatpush3.xpose.msk.msra.mxu0 %vm886_vm2, %v2515_v37  ;;  %3733 = vmatprep.mubr.msk.f32.mxu0 %vm4297_vm0, %v4298_v1 }
 0xf28   : > { %3741 = vmatprep.subr.mxu0 %v4298_v1 }
 0xf2a   : > { %3734 = vmatmul.mubr.msk.f32.vlgmr.msra.gmra.mrb[22].mxu0 %vm886_vm2, %v2513_v39  ;;  %v3095_v39 = vld [vmem:[%s5275_s29 + $0x30] sm:$0xff] }
 0xf2b   : > { %3743 = vmatprep.mubr.msk.f32.mxu0 %vm4297_vm0, %v4298_v1  ;;  %3742 = vmatpush3.msra.mxu0 %v2679_v61 }
 0xf2c   : > { %3751 = vmatprep.subr.mxu0 %v4298_v1 }
 0xf86   : > { %v2508_v40 = vpop.f32.mrb[18].mxu1 }
 0xf87   : > { %v3730_v41 = vpop.f32.mrb[19].mxu1 }
 0xf88   : > { %v3515_v41 = vld [vmem:[%s5278_s4] ss:$0 sm:$0xff] }
 0xff9   : > { %v2435_v42 = vpop.f32.mrb[20].mxu0 }
 0xffa   : > { %v2509_v43 = vadd.f32 %v2508_v40, %v2435_v42  ;;  %v3725_v44 = vpop.f32.mrb[21].mxu0 }
 0xffd   : > { %v2586_v45 = vpop.f32.mrb[22].mxu0 }
 0xffe   : > { %v2587_v46 = vadd.f32 %v2586_v45, %v4914_v5  ;;  %v3735_v47 = vpop.f32.mrb[23].mxu0 }
0x1000   : > { %v2590_v48 = vsel %vm886_vm2, %v2587_v46, -inf }
0x1001   : > { %2591 = vmax.xlane.f32.xlu1 %v2590_v48 }
0x1012   : > { %2756 = vrot.lane.b32.xlu1 %v4886_v53, %s4307_s20 }
0x1016   : > { %2754 = vrot.lane.b32.xlu1 %v4896_v59, %s4307_s20  ;;  %s5046_s20 = scalar_lea.sflag [#allocation15], %s684_s27 }
0x108e   : > { %v2592_v49 = vpop.xlane.xlu1 %2591 }
0x108f   : > { %v2593_v50 = vsub.f32 %v2587_v46, %v2592_v49 }
0x1091   : > { %v2594_v51 = vmul.f32 1.442695, %v2593_v50 }
0x1092   : > { %v2757_v58 = vpop.permute.xlu1 %2756 }
0x1093   : > { %3966 = vpow2.f32 %v2594_v51 }
0x1096   : > { %v2755_v60 = vpop.permute.xlu1 %2754 }
0x109d   : > { %v3967_v52 = vpop.eup %3966 }
0x109e   : > { %v2596_v54 = vsel %vm886_vm2, %v3967_v52, 0.0 }
0x109f   : > { %2597 = vadd.xlane.f32.xlu0 %v2596_v54 }
0x10b5   : > { %2603 = vrot.lane.b32.xlu0 %v4886_v53, %s4304_s3  ;;  %s5279_s3 = sld [smem:[#allocation43_spill]] }
0x10bb   : > { %s5039_s1 = scalar_lea.hbm %s5279_s3, %s3529_s0 }
0x112c   : > { %v2598_v55 = vpop.xlane.xlu0 %2597 }
0x112d   : > { %3968 = vrcp.f32 %v2598_v55 }
0x1130   : > { %v2604_v56 = vpop.permute.xlu0 %2603 }
0x1131   : > { %3737 = vmatpush3.msra.mxu1 %v2604_v56 }
0x1132   : > { %3746 = vmatprep.subr.mxu1 %v4298_v1 }
0x1137   : > { %v3969_v57 = vpop.eup %3968 }
0x1138   : > { %v2600_v59 = vmul.f32 %v3969_v57, %v3967_v52 }
0x113a   : > { %3506 = vst.msk [vmem:[%s4933_s25 + $0x10] sm:$0xff] %vm886_vm2, %v2600_v59  ;;  %3739 = vmatmul.mubr.msk.f32.vlgmr.msra.gmra.mrb[20].mxu1 %vm886_vm2, %v2600_v59 }
0x113b   : > { %3747 = vmatpush3.xpose.msk.msra.mxu1 %vm886_vm2, %v2757_v58  ;;  %3748 = vmatprep.mubr.msk.f32.mxu1 %vm4297_vm0, %v4298_v1 }
0x113c   : > { %3756 = vmatprep.subr.mxu1 %v4298_v1 }
0x113e   : > { %3749 = vmatmul.mubr.msk.f32.vlgmr.msra.gmra.mrb[22].mxu1 %vm886_vm2, %v2755_v60 }
0x113f   : > { %3758 = vmatprep.mubr.msk.f32.mxu1 %vm4297_vm0, %v4298_v1 }
0x120d   : > { %v2675_v62 = vpop.f32.mrb[20].mxu1 }
0x120e   : > { %v3740_v63 = vpop.f32.mrb[21].mxu1  ;;  %3744 = vmatmul.mubr.msk.f32.vlgmr.msra.gmra.mrb[24].mxu0 %vm886_vm2, %v2675_v62 }
0x120f   : > { %3753 = vmatprep.mubr.msk.f32.mxu0 %vm4297_vm0, %v4298_v1 }
0x1211   : > { %v2828_v2 = vpop.f32.mrb[22].mxu1 }
0x1212   : > { %v2829_v3 = vadd.f32 %v2828_v2, %v4914_v5  ;;  %v3750_v4 = vpop.f32.mrb[23].mxu1  ;;  %v2921_v5 = vld [vmem:[#allocation10 + $0x18] sm:$0xff] }
0x1213   : > { %3757 = vmatpush3.msra.mxu1 %v2921_v5 }
0x1214   : > { %v2832_v6 = vsel %vm886_vm2, %v2829_v3, -inf  ;;  %3815 = vmatprep.subr.bf16.mxu1 %v4296_v0 }
0x1215   : > { %2833 = vmax.xlane.f32.xlu0 %v2832_v6 }
0x122b   : > { %2845 = vrot.lane.b32.xlu0 %v4886_v53, %s4306_s21  ;;  %s3216_s21 = sshll.u32 %s4782_s30, 4  ;;  %s5042_s21 = int_to_ptr.vmem [resolvable:$true] %s3216_s21 }
0x122c   : > { %s4148_s18 = scalar_lea.vmem %s5042_s21, 512  ;;  %p4155_p7 = scmp.lt.s32.totalorder %s5042_s21, %s4153_s26 }
0x122d   : > { %p4149_p0 = scmp.ne.s32.totalorder %s5042_s21, %s4148_s18  ;;  %p4156_p3 = scmp.lt.s32.totalorder %s4154_s28, %s4148_s18 }
0x122f   : > { %p4150_p9 = pnand %p4149_p0, %p5280_p4  ;;  %p4157_p5 = por %p4156_p3, %p4155_p7 }
0x1231   : > { %p4151_p13 = pneg %p4150_p9 }
0x1233   : > { %p4158_p2 = pnand %p4157_p5, %p4151_p13 }
0x12a2   : > { %v2834_v7 = vpop.xlane.xlu0 %2833 }
0x12a3   : > { %v2835_v8 = vsub.f32 %v2829_v3, %v2834_v7 }
0x12a5   : > { %v2836_v9 = vmul.f32 1.442695, %v2835_v8 }
0x12a6   : > { %v2846_v10 = vpop.permute.xlu0 %2845 }
0x12a7   : > { %3970 = vpow2.f32 %v2836_v9  ;;  %3752 = vmatpush3.msra.mxu0 %v2846_v10 }
0x12a8   : > { %3809 = vmatprep.subr.bf16.mxu0 %v4296_v0 }
0x12b1   : > { %v3971_v12 = vpop.eup %3970 }
0x12b2   : > { %v2838_v13 = vsel %vm886_vm2, %v3971_v12, 0.0 }
0x12b3   : > { %2839 = vadd.xlane.f32.xlu1 %v2838_v13 }
0x12e1   : > { %v2749_v14 = vpop.f32.mrb[24].mxu0 }
0x12e2   : > { %v2753_v15 = vadd.f32 %v2749_v14, %v2509_v43  ;;  %v3745_v53 = vpop.f32.mrb[25].mxu0 }
0x1340   : > { %v2840_v16 = vpop.xlane.xlu1 %2839 }
0x1341   : > { %3972 = vrcp.f32 %v2840_v16 }
0x134b   : > { %v3973_v17 = vpop.eup %3972 }
0x134c   : > { %v2842_v19 = vmul.f32 %v3973_v17, %v3971_v12 }
0x134e   : > { %3511 = vst.msk [vmem:[%s4933_s25 + $0x18] sm:$0xff] %vm886_vm2, %v2842_v19  ;;  %3754 = vmatmul.mubr.msk.f32.vlgmr.msra.gmra.mrb[26].mxu0 %vm886_vm2, %v2842_v19 }
0x134f   : > { %3769 = vmatprep.mubr.msk.f32.mxu0 %vm4297_vm0, %v4298_v1  ;;  %3811 = vmatpush3.bf16.msra.mxu0 %v3810_v22 }
0x1350   : > { %3812 = vmatprep.subr.bf16.mxu0 %v4296_v0 }
0x1353   : > { %3814 = vmatpush3.bf16.msra.mxu0 %v3813_v11 }
0x1421   : > { %v2917_v23 = vpop.f32.mrb[26].mxu0 }
0x1422   : > { %v3755_v24 = vpop.f32.mrb[27].mxu0  ;;  %3759 = vmatmul.mubr.msk.f32.vlgmr.msra.gmra.mrb[24].mxu1 %vm886_vm2, %v2917_v23 }
0x1423   : > { %3788 = vmatprep.mubr.msk.f32.mxu1 %vm4297_vm0, %v4298_v1  ;;  %v3092_v1 = vld [vmem:[%s5275_s29 + $0x18] sm:$0xff]  ;;  %3817 = vmatpush3.bf16.msra.mxu1 %v3816_v29 }
0x1424   : > { %v3819_v30 = vpack.c.bf16 %v3092_v1, %v3091_v28  ;;  %3818 = vmatprep.subr.bf16.mxu1 %v4296_v0 }
0x1427   : > { %3820 = vmatpush3.bf16.msra.mxu1 %v3819_v30 }
0x1428   : > { %3821 = vmatprep.subr.bf16.mxu1 %v4296_v0 }
0x142b   : > { %3823 = vmatpush3.bf16.msra.mxu1 %v3822_v33 }
0x142c   : > { %3824 = vmatprep.subr.bf16.mxu1 %v4296_v0  ;;  %v3096_v0 = vld [vmem:[%s5275_s29 + $0x38] sm:$0xff] }
0x142d   : > { %v3825_v40 = vpack.c.bf16 %v3096_v0, %v3095_v39 }
0x142f   : > { %3826 = vmatpush3.bf16.msra.mxu1 %v3825_v40 }
0x14f5   : > { %v2991_v34 = vpop.f32.mrb[24].mxu1 }
0x14f6   : > { %v2995_v36 = vadd.f32 %v2991_v34, %v2753_v15  ;;  %v3760_v37 = vpop.f32.mrb[25].mxu1 }
0x14f8   : > { %v3003_v38 = vadd.f32 %v3514_v35, %v2995_v36 }
0x14fa   : > { %3770 = vmatmul.mubr.msk.f32.vlgmr.msra.gmra.mrb[28].mxu0 %vm807_vm1, %v3003_v38 }
0x15cd   : > { %v3084_v42 = vpop.f32.mrb[28].mxu0 }
0x15ce   : > { %v3085_v43 = vadd.f32 %v3515_v41, %v3084_v42  ;;  %v3771_v44 = vpop.f32.mrb[29].mxu0 }
0x15d0   : > { %v3088_v45 = vmax.f32 %v3085_v43, 0.0 }
0x15d2   : > { %3789 = vmatmul.mubr.msk.f32.vlgmr.msra.gmra.mrb[26].mxu1 %vm3104_vm3, %v3088_v45 }
0x15d3   : > { %4161 = shalt.err (!%p4158_p2)
}
0x15d4   : > { %s4162_s27 = scalar_lea.hbm %s5039_s1, 512  ;;  %s4166_s15 = scalar_lea.hbm %s5279_s3, 1024 }
0x15d5   : > { %p4163_p8 = scmp.ne.s32.totalorder %s5039_s1, %s4162_s27  ;;  %p4167_p1 = scmp.lt.u32.totalorder %s5039_s1, %s5279_s3 }
0x15d6   : > { %p4168_p6 = scmp.lt.u32.totalorder %s4166_s15, %s4162_s27  ;;  %p4170_p0 = scmp.lt.u32.totalorder %s4162_s27, %s5039_s1 }
0x15d7   : > { %p4164_p11 = pnand %p4163_p8, %p5280_p4 }
0x15d8   : > { %p4169_p10 = por %p4168_p6, %p4167_p1 }
0x15d9   : > { %p4165_p12 = pneg %p4164_p11 }
0x15da   : > { %p4171_p9 = por %p4170_p0, %p4169_p10 }
0x15dc   : > { %p4172_p13 = pnand %p4171_p9, %p4165_p12 }
0x15de   : > { %4175 = shalt.err (!%p4172_p13)
}
0x15df   : > { %s4311_s18 = smov 128   ;;  %s4312_s26 = smov 8  }
0x15e0   : > { %3846 = dma.vmem_to_hbm [thread:$0]  (%p5280_p4), %s5042_s21, 512, %s5039_s1, %s5046_s20, %s4311_s18, %s4311_s18, %s4312_s26  }
0x15e1   : > { %s5281_s30 = sld [smem:[#allocation44_spill]]  ;;  %s3232_s15 = sshll.u32 %s4933_s25, 4  ;;  %s5081_s15 = int_to_ptr.vmem [resolvable:$true] %s3232_s15 }
0x15e2   : > { %s4176_s16 = scalar_lea.vmem %s5081_s15, 512  ;;  %s4313_s9 = smov [#allocation16]  }
0x15e3   : > { %p4177_p7 = scmp.ne.s32.totalorder %s5081_s15, %s4176_s16  ;;  %s4180_s3 = sshll.u32 %s4313_s9, 4  ;;  %s4181_s3 = int_to_ptr.vmem [resolvable:$false] %s4180_s3 }
0x15e4   : > { %s4182_s1 = scalar_lea.vmem %s4181_s3, 1024  ;;  %p4183_p2 = scmp.lt.s32.totalorder %s5081_s15, %s4181_s3 }
0x15e5   : > { %p4178_p3 = pnand %p4177_p7, %p5280_p4  ;;  %p4184_p8 = scmp.lt.s32.totalorder %s4182_s1, %s4176_s16 }
0x15e7   : > { %s5078_s4 = scalar_lea.hbm %s5281_s30, %s3529_s0  ;;  %p4179_p5 = pneg %p4178_p3 }
0x15e8   : > { %p4185_p11 = por %p4184_p8, %p4183_p2 }
0x15ea   : > { %p4186_p12 = pnand %p4185_p11, %p4179_p5 }
0x15ec   : > { %4189 = shalt.err (!%p4186_p12)
}
0x15ed   : > { %s4190_s25 = scalar_lea.hbm %s5078_s4, 512  ;;  %s4194_s28 = scalar_lea.hbm %s5281_s30, 1024 }
0x15ee   : > { %p4191_p1 = scmp.ne.s32.totalorder %s5078_s4, %s4190_s25  ;;  %p4195_p0 = scmp.lt.u32.totalorder %s5078_s4, %s5281_s30 }
0x15ef   : > { %p4196_p9 = scmp.lt.u32.totalorder %s4194_s28, %s4190_s25  ;;  %p4198_p7 = scmp.lt.u32.totalorder %s4190_s25, %s5078_s4 }
0x15f0   : > { %p4192_p6 = pnand %p4191_p1, %p5280_p4 }
0x15f1   : > { %p4197_p13 = por %p4196_p9, %p4195_p0 }
0x15f2   : > { %p4193_p10 = pneg %p4192_p6 }
0x15f3   : > { %p4199_p3 = por %p4198_p7, %p4197_p13 }
0x15f5   : > { %p4200_p5 = pnand %p4199_p3, %p4193_p10 }
0x15f7   : > { %4203 = shalt.err (!%p4200_p5)
}
0x15f8   : > { %3847 = dma.vmem_to_hbm [thread:$0]  (%p5280_p4), %s5081_s15, 512, %s5078_s4, %s5046_s20, %s4311_s18, %s4311_s18, %s4312_s26  }
0x15f9   : > { %s5282_s1 = sld [smem:[#allocation41_spill]]  ;;  %s3522_s25 = sshll.u32 %s4441_s2, 7 }
0x15fa   : > { %s774_s0 = scalar_lea.vmem [#allocation13], %s4685_s13  ;;  %s5283_s3 = sld [smem:[#allocation42_spill]] }
0x15fb   : > { %s3203_s21 = sshll.u32 %s774_s0, 4  ;;  %s3180_s20 = scalar_lea.sflag [#allocation4], %s4682_s24  ;;  %s5118_s21 = int_to_ptr.vmem [resolvable:$true] %s3203_s21 }
0x15fc   : > { %s4204_s18 = scalar_lea.vmem %s5118_s21, 128  ;;  %s4314_s2 = smov [#allocation13]  }
0x15fd   : > { %p4205_p2 = scmp.ne.s32.totalorder %s5118_s21, %s4204_s18  ;;  %s4208_s13 = sshll.u32 %s4314_s2, 4  ;;  %s4209_s13 = int_to_ptr.vmem [resolvable:$false] %s4208_s13 }
0x15fe   : > { %s4210_s26 = scalar_lea.vmem %s4209_s13, 256  ;;  %p4211_p12 = scmp.lt.s32.totalorder %s5118_s21, %s4209_s13 }
0x15ff   : > { %v3517_v46 = vld [vmem:[%s5282_s1] ss:$0 sm:$0xff]  ;;  %p4206_p8 = pnand %p4205_p2, %p5280_p4  ;;  %p4212_p1 = scmp.lt.s32.totalorder %s4210_s26, %s4204_s18 }
0x1600   : > { %s5116_s5 = scalar_lea.hbm %s5283_s3, %s3522_s25 }
0x1601   : > { %p4207_p11 = pneg %p4206_p8  ;;  %p4213_p6 = por %p4212_p1, %p4211_p12 }
0x1603   : > { %p4214_p10 = pnand %p4213_p6, %p4207_p11 }
0x16a5   : > { %v3174_v47 = vpop.f32.mrb[26].mxu1 }
0x16a6   : > { %v3175_v48 = vadd.f32 %v3517_v46, %v3174_v47  ;;  %v3790_v49 = vpop.f32.mrb[27].mxu1 }
0x16a8   : > { %3178 = vst.msk [vmem:[%s774_s0] sm:$0xff] %vm807_vm1, %v3175_v48 }
0x16a9   : > { %4217 = shalt.err (!%p4214_p10)
}
0x16aa   : > { %s4218_s24 = scalar_lea.hbm %s5116_s5, 128  ;;  %s4222_s16 = scalar_lea.hbm %s5283_s3, 256 }
0x16ab   : > { %p4219_p0 = scmp.ne.s32.totalorder %s5116_s5, %s4218_s24  ;;  %p4223_p7 = scmp.lt.u32.totalorder %s5116_s5, %s5283_s3 }
0x16ac   : > { %p4224_p3 = scmp.lt.u32.totalorder %s4222_s16, %s4218_s24  ;;  %p4226_p2 = scmp.lt.u32.totalorder %s4218_s24, %s5116_s5 }
0x16ad   : > { %p4220_p9 = pnand %p4219_p0, %p5280_p4 }
0x16ae   : > { %p4225_p5 = por %p4224_p3, %p4223_p7 }
0x16af   : > { %p4221_p13 = pneg %p4220_p9 }
0x16b0   : > { %p4227_p8 = por %p4226_p2, %p4225_p5 }
0x16b2   : > { %p4228_p11 = pnand %p4227_p8, %p4221_p13 }
0x16b4   : > { %4231 = shalt.err (!%p4228_p11)
}
0x16b5   : > { %3845 = dma.vmem_to_hbm [thread:$0]  (%p5280_p4), %s5118_s21, 128, %s5116_s5, %s3180_s20  }
0x16b6 PF: > { %s5284_s25 = sld [smem:[#allocation23_spill]]  ;;  %s5285_s0 = sld [smem:[#allocation25_spill]] }
0x16b7   : > { %s5286_s28 = sld [smem:[#allocation24_spill]] }
0x16bc   : > { %s3247_s27 = sand.u32 1, %s5284_s25   ;;  %p5287_p12 = scmp.ne.s32.totalorder %s5285_s0, 0 }
0x16bd   : > { %p5288_p1 = scmp.ge.s32.totalorder %s5286_s28, 2  ;;  %s3248_s18 = scalar_lea.sflag [#allocation4], %s3247_s27 }
0x16bf   : > { %p3872_p6 = pnand %p5288_p1, %p5287_p12 }
0x16c1   : > { %4265 = dma.done.wait (!%p3872_p6), %s3248_s18, 128  }
0x16c2   : > { %4267 = vsyncadd (!%p3872_p6), %s3248_s18, 4294967168  ;;  %s5289_s2 = sadd.s32 4294967294, %s5286_s28  }
0x16c3   : > { %s3256_s13 = sand.u32 1, %s5289_s2  }
0x16c4   : > { %s3257_s26 = scalar_lea.sflag [#allocation15], %s3256_s13 }
0x16c5   : > { %4269 = dma.done.wait (!%p3872_p6), %s3257_s26, 1024  }
0x16c6   : > { %4271 = vsyncadd (!%p3872_p6), %s3257_s26, 4294966272  ;;  %s5290_s24 = sld [smem:[#allocation26_spill]]  ;;  %s5291_s5 = sld [smem:[#allocation27_spill]] }
0x16c7   : > { %s5292_s1 = smov %s4278_s22  ;;  %s5293_s22 = smov %s4282_s23 }
0x16cc   : > { %p42_p4 = scmp.ge.s32.totalorder %s5290_s24, 4   ;;  %s5294_s23 = smov %s5291_s5 }
0x16ce   :  { %44 = sbr.rel (!%p42_p4) target bundleno = 28 (0x1c), region = 214 }
0x16d5   :  { %3271 = vsyncpa [#allocation3], 1 }
0x16d6   :  { %3273 = vsyncpa [#allocation3 + $0x1], 1 }
0x16d7   :  { %3274 = vsyncpa [#allocation6], 1 }
0x16d8   :  { %3276 = vsyncpa [#allocation6 + $0x1], 1 }
0x16d9   :  { %3277 = vsyncpa [#allocation9], 1 }
0x16da   :  { %3278 = vsyncpa [#allocation12], 1 }
0x16db   :  { %3279 = vsyncpa [#allocation4], 1 }
0x16dc   :  { %3281 = vsyncpa [#allocation4 + $0x1], 1 }
0x16dd   :  { %3282 = vsyncpa [#allocation15], 1 }
0x16de   :  { %3284 = vsyncpa [#allocation15 + $0x1], 1 }

</bundles_post_ra>
